<compile_context>
chip_gen: v5e
topology: v5e:2x2
jax: 0.10.0
libtpu: 0.0.40
codegen_flags: <defaults>
</compile_context>

<pallas_src>
import numpy as np
import jax
import jax.numpy as jnp
from jax.experimental import pallas as pl
from jax.experimental.pallas import tpu as pltpu


_N_STAGES = 3
_EDGES_PER_STAGE = 6   # matches the hard-coded alphaDAG[:6] / [6:12] / [12:] slicing
_EPS = 1e-8            # F.cosine_similarity default eps


def _alpha_laplacian_kernel(alpha_ref, talpha_ref, mask_ref, out_ref):
    # alpha_ref / talpha_ref: (3, 6, n_nodes, n_ops) f32
    # mask_ref:               (3, 6, n_nodes, 1)     f32, mask[s,k,j,0] = (j < k+2)
    # out_ref:                (1, 1)                 f32 in SMEM
    mask = mask_ref[...]

    def eigvals(a):
        a = a.astype(jnp.float32)
        amax = jnp.max(a, axis=-1, keepdims=True)
        ex = jnp.exp(a - amax)
        denom = jnp.sum(ex, axis=-1, keepdims=True)
        # softmax(alpha, -1)[..., 0]; one reciprocal per row instead of N divides.
        p0 = ex[..., 0:1] * pl.reciprocal(denom, approx=False)   # (3, 6, R, 1)
        contrib = p0 * mask
        # eigenvalues(L) = diag(L) = row sums of A; unrolled sum over the 6 edges
        # keeps the inner loop pure VPU adds (no cross-layout reduce per step).
        vals = contrib[:, 0, :, :]
        for k in range(1, _EDGES_PER_STAGE):
            vals = vals + contrib[:, k, :, :]
        return vals                                              # (3, R, 1)

    v = jnp.abs(eigvals(alpha_ref[...]))
    t = jnp.abs(eigvals(talpha_ref[...]))

    # cosine similarity (torch eps semantics: denom clamped by eps)
    dot = jnp.sum(v * t)
    nv = jnp.sum(v * v)
    nt = jnp.sum(t * t)
    denom = jnp.sqrt(jnp.maximum(nv * nt, _EPS * _EPS))
    out_ref[0, 0] = -(dot / denom)


def _pack_alpha_dag(alphaDAG, n_nodes):
    """Stack the 18 ragged alpha matrices into a (3, 6, n_nodes, n_ops) f32 array."""
    assert len(alphaDAG) == _N_STAGES * _EDGES_PER_STAGE
    n_ops = int(alphaDAG[0].shape[-1])
    stages = []
    for s in range(_N_STAGES):
        mats = []
        for k in range(_EDGES_PER_STAGE):
            a = jnp.asarray(alphaDAG[s * _EDGES_PER_STAGE + k], dtype=jnp.float32)
            a = a[:n_nodes, :n_ops]
            rows = a.shape[0]
            if rows < n_nodes:
                a = jnp.pad(a, ((0, n_nodes - rows), (0, 0)))
            mats.append(a)
        stages.append(jnp.stack(mats, axis=0))
    return jnp.stack(stages, axis=0)


def _edge_mask(n_nodes):
    """mask[s, k, j, 0] = 1.0 iff edge matrix k (node i = k+2) contributes to row j."""
    k = np.arange(_EDGES_PER_STAGE)[:, None]
    j = np.arange(n_nodes)[None, :]
    m = (j < (k + 2)).astype(np.float32)                         # (6, n_nodes)
    m = np.broadcast_to(m[None, :, :, None],
                        (_N_STAGES, _EDGES_PER_STAGE, n_nodes, 1))
    return jnp.asarray(np.ascontiguousarray(m))


def _loss_from_packed(alpha_packed, target_packed, n_nodes):
    mask = _edge_mask(n_nodes)
    out = pl.pallas_call(
        _alpha_laplacian_kernel,
        out_shape=jax.ShapeDtypeStruct((1, 1), jnp.float32),
        grid=(1,),
        in_specs=[
            pl.BlockSpec(alpha_packed.shape, lambda i: (0, 0, 0, 0)),
            pl.BlockSpec(target_packed.shape, lambda i: (0, 0, 0, 0)),
            pl.BlockSpec(mask.shape, lambda i: (0, 0, 0, 0)),
        ],
        out_specs=pl.BlockSpec(memory_space=pltpu.SMEM),
        compiler_params=pltpu.CompilerParams(
            dimension_semantics=("arbitrary",)),
    )(alpha_packed, target_packed, mask)
    return out[0, 0]


class AlphaLaplacianLoss:
    """Pallas/JAX port of the PyTorch AlphaLaplacianLoss forward pass."""

    def __init__(self, window, n_nodes, target_alphaDAG=None):
        self.window = window
        self.n_nodes = n_nodes
        self._target_packed = None
        if target_alphaDAG is not None:
            self._target_packed = _pack_alpha_dag(target_alphaDAG, n_nodes)

    def __call__(self, alphaDAG, target_alphaDAG=None):
        if target_alphaDAG is not None:
            self._target_packed = _pack_alpha_dag(target_alphaDAG, self.n_nodes)
        assert self._target_packed is not None, "no target alphaDAG provided"
        alpha_packed = _pack_alpha_dag(alphaDAG, self.n_nodes)
        return _loss_from_packed(alpha_packed, self._target_packed, self.n_nodes)


def _reference_numpy(alphaDAG, target_alphaDAG, n_nodes):
    """Direct float64 NumPy port of the PyTorch module (incl. np.linalg.eigvals)."""

    def softmax(x):
        x = np.asarray(x, np.float64)
        e = np.exp(x - x.max(axis=-1, keepdims=True))
        return e / e.sum(axis=-1, keepdims=True)

    def laplacian(stage):
        A = np.zeros((n_nodes, n_nodes), np.float64)
        for i in range(2, n_nodes):
            al = softmax(stage[i - 2])
            for j in range(i):
                A[j, i] = al[j, 0]
        return np.diag(A.sum(axis=1)) - A

    def eig_concat(dag):
        vals = []
        for s in range(_N_STAGES):
            L = laplacian(dag[_EDGES_PER_STAGE * s: _EDGES_PER_STAGE * (s + 1)])
            vals.append(np.linalg.eigvals(L))
        return np.concatenate(vals)

    v = np.abs(eig_concat(alphaDAG))
    t = np.abs(eig_concat(target_alphaDAG))
    num = float(np.real(np.dot(v, t)))
    den = max(float(np.linalg.norm(v) * np.linalg.norm(t)), _EPS)
    return -(num / den)


if __name__ == "__main__":
    n_nodes, n_ops, window = 8, 7, 7
    key = jax.random.PRNGKey(0)

    alphaDAG, target_alphaDAG = [], []
    for idx in range(_N_STAGES * _EDGES_PER_STAGE):
        rows = (idx % _EDGES_PER_STAGE) + 2       # alpha_dag[k] has k+2 rows
        key, k1, k2 = jax.random.split(key, 3)
        alphaDAG.append(jax.random.normal(k1, (rows, n_ops), dtype=jnp.float32))
        target_alphaDAG.append(jax.random.normal(k2, (rows, n_ops), dtype=jnp.float32))

    loss_mod = AlphaLaplacianLoss(window, n_nodes, target_alphaDAG=target_alphaDAG)
    loss = loss_mod(alphaDAG)
    loss = jax.block_until_ready(loss)

    ref = _reference_numpy([np.asarray(a) for a in alphaDAG],
                           [np.asarray(a) for a in target_alphaDAG], n_nodes)
    assert abs(float(loss) - float(ref)) < 1e-5, (float(loss), float(ref))

    print("KERNEL_OK")
</pallas_src>

<mosaic_0001>
module attributes {stable_mosaic.version = 11 : i64} {
  func.func @_alpha_laplacian_kernel(%arg0: i32, %arg1: memref<3x6x8x7xf32, #tpu.memory_space<vmem>>, %arg2: memref<3x6x8x7xf32, #tpu.memory_space<vmem>>, %arg3: memref<3x6x8x1xf32, #tpu.memory_space<vmem>>, %arg4: memref<1x1xf32, #tpu.memory_space<smem>>) attributes {dimension_semantics = [#tpu.dimension_semantics<arbitrary>], iteration_bounds = array<i64: 1>, scalar_prefetch = 0 : i64, scratch_operands = 0 : i64, tpu.core_type = #tpu.core_type<tc>, window_params = [{pipeline_mode = #tpu.pipeline_mode<synchronous>, transform_indices = @transform_0, window_bounds = array<i64: 3, 6, 8, 7>}, {pipeline_mode = #tpu.pipeline_mode<synchronous>, transform_indices = @transform_1, window_bounds = array<i64: 3, 6, 8, 7>}, {pipeline_mode = #tpu.pipeline_mode<synchronous>, transform_indices = @transform_2, window_bounds = array<i64: 3, 6, 8, 1>}, {transform_indices = @transform_3, window_bounds = array<i64: 1, 1>}]} {
    %c0 = arith.constant 0 : index
    %c0_0 = arith.constant 0 : index
    %c0_1 = arith.constant 0 : index
    %c0_2 = arith.constant 0 : index
    %0 = vector.load %arg3[%c0, %c0_0, %c0_1, %c0_2] : memref<3x6x8x1xf32, #tpu.memory_space<vmem>>, vector<3x6x8x1xf32>
    %c0_3 = arith.constant 0 : index
    %c0_4 = arith.constant 0 : index
    %c0_5 = arith.constant 0 : index
    %c0_6 = arith.constant 0 : index
    %1 = vector.load %arg1[%c0_3, %c0_4, %c0_5, %c0_6] : memref<3x6x8x7xf32, #tpu.memory_space<vmem>>, vector<3x6x8x7xf32>
    %cst = arith.constant dense<0xFF800000> : vector<3x6x8xf32>
    %2 = vector.multi_reduction <maximumf>, %1, %cst [3] : vector<3x6x8x7xf32> to vector<3x6x8xf32>
    %3 = vector.shape_cast %2 : vector<3x6x8xf32> to vector<3x6x8x1xf32>
    %4 = vector.broadcast %3 : vector<3x6x8x1xf32> to vector<3x6x8x7xf32>
    %5 = arith.subf %1, %4 : vector<3x6x8x7xf32>
    %6 = math.exp %5 : vector<3x6x8x7xf32>
    %cst_7 = arith.constant dense<0.000000e+00> : vector<3x6x8xf32>
    %7 = vector.multi_reduction <add>, %6, %cst_7 [3] : vector<3x6x8x7xf32> to vector<3x6x8xf32>
    %8 = vector.shape_cast %7 : vector<3x6x8xf32> to vector<3x6x8x1xf32>
    %9 = vector.extract_strided_slice %6 {offsets = [0, 0, 0, 0], sizes = [3, 6, 8, 1], strides = [1, 1, 1, 1]} : vector<3x6x8x7xf32> to vector<3x6x8x1xf32>
    %10 = tpu.reciprocal %8 : vector<3x6x8x1xf32> -> vector<3x6x8x1xf32>
    %11 = arith.mulf %9, %10 : vector<3x6x8x1xf32>
    %12 = arith.mulf %11, %0 : vector<3x6x8x1xf32>
    %13 = vector.extract_strided_slice %12 {offsets = [0, 0, 0, 0], sizes = [3, 1, 8, 1], strides = [1, 1, 1, 1]} : vector<3x6x8x1xf32> to vector<3x1x8x1xf32>
    %14 = vector.shape_cast %13 : vector<3x1x8x1xf32> to vector<3x8x1xf32>
    %15 = vector.extract_strided_slice %12 {offsets = [0, 1, 0, 0], sizes = [3, 1, 8, 1], strides = [1, 1, 1, 1]} : vector<3x6x8x1xf32> to vector<3x1x8x1xf32>
    %16 = vector.shape_cast %15 : vector<3x1x8x1xf32> to vector<3x8x1xf32>
    %17 = arith.addf %14, %16 : vector<3x8x1xf32>
    %18 = vector.extract_strided_slice %12 {offsets = [0, 2, 0, 0], sizes = [3, 1, 8, 1], strides = [1, 1, 1, 1]} : vector<3x6x8x1xf32> to vector<3x1x8x1xf32>
    %19 = vector.shape_cast %18 : vector<3x1x8x1xf32> to vector<3x8x1xf32>
    %20 = arith.addf %17, %19 : vector<3x8x1xf32>
    %21 = vector.extract_strided_slice %12 {offsets = [0, 3, 0, 0], sizes = [3, 1, 8, 1], strides = [1, 1, 1, 1]} : vector<3x6x8x1xf32> to vector<3x1x8x1xf32>
    %22 = vector.shape_cast %21 : vector<3x1x8x1xf32> to vector<3x8x1xf32>
    %23 = arith.addf %20, %22 : vector<3x8x1xf32>
    %24 = vector.extract_strided_slice %12 {offsets = [0, 4, 0, 0], sizes = [3, 1, 8, 1], strides = [1, 1, 1, 1]} : vector<3x6x8x1xf32> to vector<3x1x8x1xf32>
    %25 = vector.shape_cast %24 : vector<3x1x8x1xf32> to vector<3x8x1xf32>
    %26 = arith.addf %23, %25 : vector<3x8x1xf32>
    %27 = vector.extract_strided_slice %12 {offsets = [0, 5, 0, 0], sizes = [3, 1, 8, 1], strides = [1, 1, 1, 1]} : vector<3x6x8x1xf32> to vector<3x1x8x1xf32>
    %28 = vector.shape_cast %27 : vector<3x1x8x1xf32> to vector<3x8x1xf32>
    %29 = arith.addf %26, %28 : vector<3x8x1xf32>
    %30 = math.absf %29 : vector<3x8x1xf32>
    %c0_8 = arith.constant 0 : index
    %c0_9 = arith.constant 0 : index
    %c0_10 = arith.constant 0 : index
    %c0_11 = arith.constant 0 : index
    %31 = vector.load %arg2[%c0_8, %c0_9, %c0_10, %c0_11] : memref<3x6x8x7xf32, #tpu.memory_space<vmem>>, vector<3x6x8x7xf32>
    %cst_12 = arith.constant dense<0xFF800000> : vector<3x6x8xf32>
    %32 = vector.multi_reduction <maximumf>, %31, %cst_12 [3] : vector<3x6x8x7xf32> to vector<3x6x8xf32>
    %33 = vector.shape_cast %32 : vector<3x6x8xf32> to vector<3x6x8x1xf32>
    %34 = vector.broadcast %33 : vector<3x6x8x1xf32> to vector<3x6x8x7xf32>
    %35 = arith.subf %31, %34 : vector<3x6x8x7xf32>
    %36 = math.exp %35 : vector<3x6x8x7xf32>
    %cst_13 = arith.constant dense<0.000000e+00> : vector<3x6x8xf32>
    %37 = vector.multi_reduction <add>, %36, %cst_13 [3] : vector<3x6x8x7xf32> to vector<3x6x8xf32>
    %38 = vector.shape_cast %37 : vector<3x6x8xf32> to vector<3x6x8x1xf32>
    %39 = vector.extract_strided_slice %36 {offsets = [0, 0, 0, 0], sizes = [3, 6, 8, 1], strides = [1, 1, 1, 1]} : vector<3x6x8x7xf32> to vector<3x6x8x1xf32>
    %40 = tpu.reciprocal %38 : vector<3x6x8x1xf32> -> vector<3x6x8x1xf32>
    %41 = arith.mulf %39, %40 : vector<3x6x8x1xf32>
    %42 = arith.mulf %41, %0 : vector<3x6x8x1xf32>
    %43 = vector.extract_strided_slice %42 {offsets = [0, 0, 0, 0], sizes = [3, 1, 8, 1], strides = [1, 1, 1, 1]} : vector<3x6x8x1xf32> to vector<3x1x8x1xf32>
    %44 = vector.shape_cast %43 : vector<3x1x8x1xf32> to vector<3x8x1xf32>
    %45 = vector.extract_strided_slice %42 {offsets = [0, 1, 0, 0], sizes = [3, 1, 8, 1], strides = [1, 1, 1, 1]} : vector<3x6x8x1xf32> to vector<3x1x8x1xf32>
    %46 = vector.shape_cast %45 : vector<3x1x8x1xf32> to vector<3x8x1xf32>
    %47 = arith.addf %44, %46 : vector<3x8x1xf32>
    %48 = vector.extract_strided_slice %42 {offsets = [0, 2, 0, 0], sizes = [3, 1, 8, 1], strides = [1, 1, 1, 1]} : vector<3x6x8x1xf32> to vector<3x1x8x1xf32>
    %49 = vector.shape_cast %48 : vector<3x1x8x1xf32> to vector<3x8x1xf32>
    %50 = arith.addf %47, %49 : vector<3x8x1xf32>
    %51 = vector.extract_strided_slice %42 {offsets = [0, 3, 0, 0], sizes = [3, 1, 8, 1], strides = [1, 1, 1, 1]} : vector<3x6x8x1xf32> to vector<3x1x8x1xf32>
    %52 = vector.shape_cast %51 : vector<3x1x8x1xf32> to vector<3x8x1xf32>
    %53 = arith.addf %50, %52 : vector<3x8x1xf32>
    %54 = vector.extract_strided_slice %42 {offsets = [0, 4, 0, 0], sizes = [3, 1, 8, 1], strides = [1, 1, 1, 1]} : vector<3x6x8x1xf32> to vector<3x1x8x1xf32>
    %55 = vector.shape_cast %54 : vector<3x1x8x1xf32> to vector<3x8x1xf32>
    %56 = arith.addf %53, %55 : vector<3x8x1xf32>
    %57 = vector.extract_strided_slice %42 {offsets = [0, 5, 0, 0], sizes = [3, 1, 8, 1], strides = [1, 1, 1, 1]} : vector<3x6x8x1xf32> to vector<3x1x8x1xf32>
    %58 = vector.shape_cast %57 : vector<3x1x8x1xf32> to vector<3x8x1xf32>
    %59 = arith.addf %56, %58 : vector<3x8x1xf32>
    %60 = math.absf %59 : vector<3x8x1xf32>
    %61 = arith.mulf %30, %60 : vector<3x8x1xf32>
    %62 = vector.shape_cast %61 : vector<3x8x1xf32> to vector<1x3x8x1xf32>
    %cst_14 = arith.constant dense<0.000000e+00> : vector<1xf32>
    %63 = vector.multi_reduction <add>, %62, %cst_14 [1, 2, 3] : vector<1x3x8x1xf32> to vector<1xf32>
    %64 = vector.shape_cast %63 : vector<1xf32> to vector<1x1x1x1xf32>
    %65 = vector.extract %64[0, 0, 0, 0] : f32 from vector<1x1x1x1xf32>
    %66 = arith.mulf %30, %30 : vector<3x8x1xf32>
    %67 = vector.shape_cast %66 : vector<3x8x1xf32> to vector<1x3x8x1xf32>
    %cst_15 = arith.constant dense<0.000000e+00> : vector<1xf32>
    %68 = vector.multi_reduction <add>, %67, %cst_15 [1, 2, 3] : vector<1x3x8x1xf32> to vector<1xf32>
    %69 = vector.shape_cast %68 : vector<1xf32> to vector<1x1x1x1xf32>
    %70 = vector.extract %69[0, 0, 0, 0] : f32 from vector<1x1x1x1xf32>
    %71 = arith.mulf %60, %60 : vector<3x8x1xf32>
    %72 = vector.shape_cast %71 : vector<3x8x1xf32> to vector<1x3x8x1xf32>
    %cst_16 = arith.constant dense<0.000000e+00> : vector<1xf32>
    %73 = vector.multi_reduction <add>, %72, %cst_16 [1, 2, 3] : vector<1x3x8x1xf32> to vector<1xf32>
    %74 = vector.shape_cast %73 : vector<1xf32> to vector<1x1x1x1xf32>
    %75 = vector.extract %74[0, 0, 0, 0] : f32 from vector<1x1x1x1xf32>
    %76 = arith.mulf %70, %75 : f32
    %cst_17 = arith.constant 1.000000e-16 : f32
    %77 = arith.maximumf %76, %cst_17 : f32
    %78 = math.sqrt %77 : f32
    %79 = arith.divf %65, %78 : f32
    %cst_18 = arith.constant 0.000000e+00 : f32
    %80 = arith.subf %cst_18, %79 : f32
    %c0_19 = arith.constant 0 : index
    %c0_20 = arith.constant 0 : index
    %81 = memref.load %arg4[%c0_19, %c0_20] : memref<1x1xf32, #tpu.memory_space<smem>>
    memref.store %80, %arg4[%c0_19, %c0_20] : memref<1x1xf32, #tpu.memory_space<smem>>
    return
  }
  func.func @transform_0(%arg0: i32) -> (i32, i32, i32, i32) {
    %c0_i32 = arith.constant 0 : i32
    %c0_i32_0 = arith.constant 0 : i32
    %c0_i32_1 = arith.constant 0 : i32
    %c0_i32_2 = arith.constant 0 : i32
    %c0_i32_3 = arith.constant 0 : i32
    return %c0_i32, %c0_i32_0, %c0_i32_1, %c0_i32_2 : i32, i32, i32, i32
  }
  func.func @transform_1(%arg0: i32) -> (i32, i32, i32, i32) {
    %c0_i32 = arith.constant 0 : i32
    %c0_i32_0 = arith.constant 0 : i32
    %c0_i32_1 = arith.constant 0 : i32
    %c0_i32_2 = arith.constant 0 : i32
    %c0_i32_3 = arith.constant 0 : i32
    return %c0_i32, %c0_i32_0, %c0_i32_1, %c0_i32_2 : i32, i32, i32, i32
  }
  func.func @transform_2(%arg0: i32) -> (i32, i32, i32, i32) {
    %c0_i32 = arith.constant 0 : i32
    %c0_i32_0 = arith.constant 0 : i32
    %c0_i32_1 = arith.constant 0 : i32
    %c0_i32_2 = arith.constant 0 : i32
    %c0_i32_3 = arith.constant 0 : i32
    return %c0_i32, %c0_i32_0, %c0_i32_1, %c0_i32_2 : i32, i32, i32, i32
  }
  func.func @transform_3(%arg0: i32) -> (i32, i32) {
    %c0_i32 = arith.constant 0 : i32
    %c0_i32_0 = arith.constant 0 : i32
    %c0_i32_1 = arith.constant 0 : i32
    return %c0_i32, %c0_i32_0 : i32, i32
  }
}

</mosaic_0001>

<bundles_post_ra>
// kernel: tpu_custom_call.1
= control target key start
LH: loop header
LB: loop body
LE: loop exit
PB: predicated region body
PF: predicated region fallthrough
CT: control target
= control target key end

     0   :  { %8 = vsyncpa [#allocation3], 0  ;;  %s2653_s0 = inlined_call_operand.vmem [shape: f32[3,6,8,7], index: 0, kind: input, shape index: {}]   ;;  %s2654_s1 = inlined_call_operand.hbm [shape: f32[3,6,8,7], index: 1, kind: input, shape index: {}]   ;;  %s2655_s2 = inlined_call_operand.vmem [shape: f32[3,6,8,1], index: 2, kind: input, shape index: {}]   ;;  %s2656_s3 = inlined_call_operand.hbm [shape: f32[1,1], index: 3, kind: output, shape index: {}]  }
   0x1   :  { %9 = vsyncpa [#allocation4], 0  ;;  %s16_s14 = sshll.u32 %s2654_s1, 4  ;;  %s1329_s15 = smov [#allocation2]   ;;  %s17_s14 = int_to_ptr.hbm [resolvable:$true] %s16_s14 }
   0x2   :  { %s18_s16 = sshll.u32 %s1329_s15, 4  ;;  %s1330_s17 = smov 128   ;;  %s19_s16 = int_to_ptr.vmem [resolvable:$true] %s18_s16 }
   0x3   :  { %s1331_s18 = smov 8  }
   0x4   :  { %24 = dma.hbm_to_vmem [thread:$0]  %s17_s14, 2304, %s19_s16, [#allocation3], %s1330_s17, %s1330_s17, %s1331_s18  }
   0x5   :  { %1325 = dma.done.wait [#allocation3], 2304  }
   0x6   :  { %1326 = vsyncadd [#allocation3], 4294964992  ;;  %vm67_vm0 = vcmask 56320   ;;  %v1357_v0 = vld [vmem:[#allocation2] sm:$0xff]  ;;  %v1362_v1 = vld [vmem:[%s2653_s0 + $0x30] sm:$0xff]  ;;  %s1115_s14 = sshll.u32 %s2656_s3, 4  ;;  %s1116_s14 = int_to_ptr.hbm [resolvable:$true] %s1115_s14 }
   0x7   :  { %v1367_v2 = vld [vmem:[%s2653_s0] sm:$0xff]  ;;  %v554_v3 = vsel %vm67_vm0, %v1357_v0, -inf  ;;  %v86_v4 = vsel %vm67_vm0, %v1362_v1, -inf  ;;  %v1375_v6 = vld [vmem:[#allocation2 + $0x8] sm:$0xff]  ;;  %v1380_v7 = vld [vmem:[%s2653_s0 + $0x38] sm:$0xff]  ;;  %s1333_s17 = smov [#allocation5]  }
   0x8   :  { %v68_v5 = vsel %vm67_vm0, %v1367_v2, -inf  ;;  %555 = vmax.xlane.f32.xlu2 %v554_v3  ;;  %87 = vmax.xlane.f32.xlu1 %v86_v4  ;;  %v1385_v8 = vld [vmem:[%s2653_s0 + $0x8] sm:$0xff]  ;;  %v557_v9 = vsel %vm67_vm0, %v1375_v6, -inf  ;;  %v89_v10 = vsel %vm67_vm0, %v1380_v7, -inf  ;;  %v1396_v12 = vld [vmem:[%s2653_s0 + $0x10] sm:$0xff]  ;;  %v1398_v13 = vld [vmem:[#allocation2 + $0x38] sm:$0xff] }
   0x9   :  { %69 = vmax.xlane.f32.xlu0 %v68_v5  ;;  %v71_v11 = vsel %vm67_vm0, %v1385_v8, -inf  ;;  %v1400_v14 = vld [vmem:[#allocation2 + $0x30] sm:$0xff]  ;;  %v74_v15 = vsel %vm67_vm0, %v1396_v12, -inf  ;;  %v575_v16 = vsel %vm67_vm0, %v1398_v13, -inf  ;;  %v1411_v18 = vld [vmem:[%s2653_s0 + $0x68] sm:$0xff]  ;;  %v1416_v19 = vld [vmem:[%s2653_s0 + $0x60] sm:$0xff] }
   0xa   :  { %v572_v17 = vsel %vm67_vm0, %v1400_v14, -inf  ;;  %v1421_v20 = vld [vmem:[%s2653_s0 + $0x40] sm:$0xff]  ;;  %v107_v21 = vsel %vm67_vm0, %v1411_v18, -inf  ;;  %v104_v22 = vsel %vm67_vm0, %v1416_v19, -inf  ;;  %v1433_v26 = vld [vmem:[#allocation2 + $0x10] sm:$0xff]  ;;  %v1444_v30 = vld [vmem:[%s2653_s0 + $0x48] sm:$0xff] }
   0xb   :  { %v92_v23 = vsel %vm67_vm0, %v1421_v20, -inf  ;;  %v1429_v24 = vld [vmem:[#allocation2 + $0x60] sm:$0xff]  ;;  %v560_v29 = vsel %vm67_vm0, %v1433_v26, -inf  ;;  %v1449_v31 = vld [vmem:[%s2653_s0 + $0x18] sm:$0xff]  ;;  %v1451_v32 = vld [vmem:[#allocation2 + $0x68] sm:$0xff]  ;;  %v95_v33 = vsel %vm67_vm0, %v1444_v30, -inf }
   0xc   :  { %v1431_v25 = vld [vmem:[#allocation2 + $0x40] sm:$0xff]  ;;  %v590_v27 = vsel %vm67_vm0, %v1429_v24, -inf  ;;  %v77_v34 = vsel %vm67_vm0, %v1449_v31, -inf  ;;  %v593_v35 = vsel %vm67_vm0, %v1451_v32, -inf  ;;  %v1459_v36 = vld [vmem:[#allocation2 + $0x48] sm:$0xff]  ;;  %v1461_v37 = vld [vmem:[#allocation2 + $0x18] sm:$0xff] }
   0xd   :  { %v578_v28 = vsel %vm67_vm0, %v1431_v25, -inf  ;;  %v1466_v38 = vld [vmem:[%s2653_s0 + $0x70] sm:$0xff]  ;;  %v581_v39 = vsel %vm67_vm0, %v1459_v36, -inf  ;;  %v563_v40 = vsel %vm67_vm0, %v1461_v37, -inf  ;;  %v1482_v43 = vld [vmem:[%s2653_s0 + $0x20] sm:$0xff]  ;;  %v1499_v50 = vld [vmem:[%s2653_s0 + $0x78] sm:$0xff] }
   0xe   :  { %v110_v41 = vsel %vm67_vm0, %v1466_v38, -inf  ;;  %v1477_v42 = vld [vmem:[%s2653_s0 + $0x50] sm:$0xff]  ;;  %v80_v46 = vsel %vm67_vm0, %v1482_v43, -inf  ;;  %v1494_v49 = vld [vmem:[#allocation2 + $0x20] sm:$0xff]  ;;  %v113_v53 = vsel %vm67_vm0, %v1499_v50, -inf  ;;  %v1510_v54 = vld [vmem:[%s2653_s0 + $0x58] sm:$0xff] }
   0xf   :  { %v1484_v44 = vld [vmem:[#allocation2 + $0x70] sm:$0xff]  ;;  %v98_v45 = vsel %vm67_vm0, %v1477_v42, -inf  ;;  %v566_v52 = vsel %vm67_vm0, %v1494_v49, -inf  ;;  %v1515_v55 = vld [vmem:[%s2653_s0 + $0x28] sm:$0xff]  ;;  %v1517_v56 = vld [vmem:[#allocation2 + $0x78] sm:$0xff]  ;;  %v101_v57 = vsel %vm67_vm0, %v1510_v54, -inf }
  0x10   :  { %558 = vmax.xlane.f32.xlu2 %v557_v9  ;;  %90 = vmax.xlane.f32.xlu1 %v89_v10  ;;  %v596_v47 = vsel %vm67_vm0, %v1484_v44, -inf  ;;  %v1492_v48 = vld [vmem:[#allocation2 + $0x50] sm:$0xff]  ;;  %v83_v58 = vsel %vm67_vm0, %v1515_v55, -inf  ;;  %v599_v59 = vsel %vm67_vm0, %v1517_v56, -inf  ;;  %v1525_v60 = vld [vmem:[#allocation2 + $0x58] sm:$0xff]  ;;  %v1527_v61 = vld [vmem:[#allocation2 + $0x28] sm:$0xff] }
  0x11   :  { %72 = vmax.xlane.f32.xlu0 %v71_v11  ;;  %v584_v51 = vsel %vm67_vm0, %v1492_v48, -inf  ;;  %v1532_v62 = vld [vmem:[%s2653_s0 + $0x80] sm:$0xff]  ;;  %v587_v63 = vsel %vm67_vm0, %v1525_v60, -inf  ;;  %v569_v3 = vsel %vm67_vm0, %v1527_v61, -inf  ;;  %v1540_v5 = vld [vmem:[#allocation2 + $0x88] sm:$0xff] }
  0x12   :  { %v116_v4 = vsel %vm67_vm0, %v1532_v62, -inf  ;;  %v1545_v9 = vld [vmem:[%s2653_s0 + $0x88] sm:$0xff]  ;;  %v1547_v10 = vld [vmem:[#allocation2 + $0x80] sm:$0xff]  ;;  %v605_v11 = vsel %vm67_vm0, %v1540_v5, -inf  ;;  %s1332_s8 = smov 1e-16  }
  0x18   :  { %75 = vmax.xlane.f32.xlu2 %v74_v15  ;;  %576 = vmax.xlane.f32.xlu1 %v575_v16  ;;  %v119_v15 = vsel %vm67_vm0, %v1545_v9, -inf  ;;  %v602_v16 = vsel %vm67_vm0, %v1547_v10, -inf }
  0x19   :  { %573 = vmax.xlane.f32.xlu0 %v572_v17 }
  0x20   :  { %108 = vmax.xlane.f32.xlu2 %v107_v21  ;;  %105 = vmax.xlane.f32.xlu1 %v104_v22 }
  0x21   :  { %93 = vmax.xlane.f32.xlu0 %v92_v23 }
  0x28   :  { %591 = vmax.xlane.f32.xlu2 %v590_v27  ;;  %579 = vmax.xlane.f32.xlu1 %v578_v28 }
  0x29   :  { %561 = vmax.xlane.f32.xlu0 %v560_v29 }
  0x30   :  { %96 = vmax.xlane.f32.xlu2 %v95_v33  ;;  %78 = vmax.xlane.f32.xlu1 %v77_v34 }
  0x31   :  { %594 = vmax.xlane.f32.xlu0 %v593_v35 }
  0x38   :  { %582 = vmax.xlane.f32.xlu2 %v581_v39  ;;  %564 = vmax.xlane.f32.xlu1 %v563_v40 }
  0x39   :  { %111 = vmax.xlane.f32.xlu0 %v110_v41 }
  0x40   :  { %99 = vmax.xlane.f32.xlu2 %v98_v45  ;;  %81 = vmax.xlane.f32.xlu1 %v80_v46 }
  0x41   :  { %597 = vmax.xlane.f32.xlu0 %v596_v47 }
  0x48   :  { %585 = vmax.xlane.f32.xlu2 %v584_v51  ;;  %567 = vmax.xlane.f32.xlu1 %v566_v52 }
  0x49   :  { %114 = vmax.xlane.f32.xlu0 %v113_v53 }
  0x50   :  { %102 = vmax.xlane.f32.xlu2 %v101_v57  ;;  %84 = vmax.xlane.f32.xlu1 %v83_v58 }
  0x51   :  { %600 = vmax.xlane.f32.xlu0 %v599_v59 }
  0x58   :  { %588 = vmax.xlane.f32.xlu2 %v587_v63  ;;  %570 = vmax.xlane.f32.xlu1 %v569_v3 }
  0x59   :  { %117 = vmax.xlane.f32.xlu0 %v116_v4 }
  0x60   :  { %606 = vmax.xlane.f32.xlu2 %v605_v11  ;;  %120 = vmax.xlane.f32.xlu1 %v119_v15 }
  0x61   :  { %603 = vmax.xlane.f32.xlu0 %v602_v16 }
  0x7b   :  { %v556_v17 = vpop.xlane.xlu2 %555  ;;  %v88_v21 = vpop.xlane.xlu1 %87 }
  0x7c   :  { %v128_v22 = vsub.f32 %v1362_v1, %v88_v21  ;;  %v70_v23 = vpop.xlane.xlu0 %69  ;;  %v608_v1 = vsub.f32 %v1357_v0, %v556_v17 }
  0x7d   :  { %v122_v27 = vsub.f32 %v1367_v2, %v70_v23 }
  0x7e   :  { %v152_v28 = vmul.f32 1.442695, %v128_v22 }
  0x7f   :  { %v140_v29 = vmul.f32 1.442695, %v122_v27 }
  0x80   :  { %1141 = vpow2.f32 %v152_v28 }
  0x81   :  { %1143 = vpow2.f32 %v140_v29 }
  0x83   :  { %v559_v33 = vpop.xlane.xlu2 %558  ;;  %v91_v34 = vpop.xlane.xlu1 %90 }
  0x84   :  { %v609_v35 = vsub.f32 %v1375_v6, %v559_v33  ;;  %v129_v39 = vsub.f32 %v1380_v7, %v91_v34  ;;  %v73_v40 = vpop.xlane.xlu0 %72  ;;  %v626_v7 = vmul.f32 1.442695, %v608_v1 }
  0x85   :  { %v123_v41 = vsub.f32 %v1385_v8, %v73_v40 }
  0x86   :  { %v628_v45 = vmul.f32 1.442695, %v609_v35  ;;  %v154_v46 = vmul.f32 1.442695, %v129_v39  ;;  %v1560_v47 = vpop.eup %1141 }
  0x87   :  { %v142_v2 = vmul.f32 1.442695, %v123_v41  ;;  %v1563_v51 = vpop.eup %1143  ;;  %v194_v52 = vsel %vm67_vm0, %v1560_v47, 0.0 }
  0x88   :  { %1145 = vpow2.f32 %v628_v45  ;;  %195 = vadd.xlane.f32.xlu2 %v194_v52  ;;  %v176_v6 = vsel %vm67_vm0, %v1563_v51, 0.0 }
  0x89   :  { %1147 = vpow2.f32 %v154_v46  ;;  %177 = vadd.xlane.f32.xlu0 %v176_v6 }
  0x8a   :  { %1149 = vpow2.f32 %v142_v2 }
  0x8b   :  { %v76_v8 = vpop.xlane.xlu2 %75  ;;  %v577_v53 = vpop.xlane.xlu1 %576  ;;  %1151 = vpow2.f32 %v626_v7 }
  0x8c   :  { %v124_v57 = vsub.f32 %v1396_v12, %v76_v8  ;;  %v574_v0 = vpop.xlane.xlu0 %573  ;;  %v615_v3 = vsub.f32 %v1398_v13, %v577_v53 }
  0x8d   :  { %v614_v58 = vsub.f32 %v1400_v14, %v574_v0 }
  0x8e   :  { %v1571_v59 = vpop.eup %1145  ;;  %v144_v63 = vmul.f32 1.442695, %v124_v57  ;;  %v640_v13 = vmul.f32 1.442695, %v615_v3 }
  0x8f   :  { %v1574_v4 = vpop.eup %1147  ;;  %v638_v11 = vmul.f32 1.442695, %v614_v58  ;;  %v665_v15 = vsel %vm67_vm0, %v1571_v59, 0.0 }
  0x90   :  { %v1578_v16 = vpop.eup %1149  ;;  %1153 = vpow2.f32 %v144_v63  ;;  %v197_v12 = vsel %vm67_vm0, %v1574_v4, 0.0  ;;  %666 = vadd.xlane.f32.xlu2 %v665_v15 }
  0x91   :  { %1155 = vpow2.f32 %v638_v11  ;;  %v179_v14 = vsel %vm67_vm0, %v1578_v16, 0.0  ;;  %198 = vadd.xlane.f32.xlu0 %v197_v12  ;;  %v1585_v27 = vpop.eup %1151 }
  0x92   :  { %180 = vadd.xlane.f32.xlu1 %v179_v14  ;;  %1157 = vpow2.f32 %v640_v13 }
  0x93   :  { %v109_v17 = vpop.xlane.xlu2 %108  ;;  %v106_v21 = vpop.xlane.xlu1 %105 }
  0x94   :  { %v135_v22 = vsub.f32 %v1411_v18, %v109_v17  ;;  %v94_v23 = vpop.xlane.xlu0 %93  ;;  %v134_v34 = vsub.f32 %v1416_v19, %v106_v21 }
  0x95   :  { %v130_v28 = vsub.f32 %v1421_v20, %v94_v23  ;;  %v662_v20 = vsel %vm67_vm0, %v1585_v27, 0.0 }
  0x96   :  { %v1588_v29 = vpop.eup %1153  ;;  %v166_v33 = vmul.f32 1.442695, %v135_v22  ;;  %v164_v41 = vmul.f32 1.442695, %v134_v34 }
  0x97   :  { %v1591_v35 = vpop.eup %1155  ;;  %v156_v39 = vmul.f32 1.442695, %v130_v28  ;;  %v182_v40 = vsel %vm67_vm0, %v1588_v29, 0.0 }
  0x98   :  { %1159 = vpow2.f32 %v166_v33  ;;  %v680_v18 = vsel %vm67_vm0, %v1591_v35, 0.0  ;;  %183 = vadd.xlane.f32.xlu2 %v182_v40  ;;  %v1599_v46 = vpop.eup %1157 }
  0x99   :  { %1161 = vpow2.f32 %v156_v39  ;;  %681 = vadd.xlane.f32.xlu0 %v680_v18  ;;  %v683_v58 = vsel %vm67_vm0, %v1599_v46, 0.0 }
  0x9a   :  { %663 = vadd.xlane.f32.xlu1 %v662_v20  ;;  %1163 = vpow2.f32 %v164_v41 }
  0x9b   :  { %v592_v45 = vpop.xlane.xlu2 %591  ;;  %v580_v19 = vpop.xlane.xlu1 %579 }
  0x9c   :  { %v620_v1 = vsub.f32 %v1429_v24, %v592_v45  ;;  %v562_v2 = vpop.xlane.xlu0 %561  ;;  %v616_v8 = vsub.f32 %v1431_v25, %v580_v19 }
  0x9d   :  { %v610_v52 = vsub.f32 %v1433_v26, %v562_v2 }
  0x9e   :  { %v1603_v6 = vpop.eup %1159  ;;  %v650_v7 = vmul.f32 1.442695, %v620_v1  ;;  %v642_v26 = vmul.f32 1.442695, %v616_v8 }
  0x9f   :  { %v1606_v53 = vpop.eup %1161  ;;  %v630_v57 = vmul.f32 1.442695, %v610_v52  ;;  %v215_v0 = vsel %vm67_vm0, %v1603_v6, 0.0 }
  0xa0   :  { %1165 = vpow2.f32 %v650_v7  ;;  %v200_v24 = vsel %vm67_vm0, %v1606_v53, 0.0  ;;  %216 = vadd.xlane.f32.xlu2 %v215_v0  ;;  %v1614_v3 = vpop.eup %1163 }
  0xa1   :  { %1167 = vpow2.f32 %v630_v57  ;;  %201 = vadd.xlane.f32.xlu0 %v200_v24  ;;  %v212_v28 = vsel %vm67_vm0, %v1614_v3, 0.0 }
  0xa2   :  { %684 = vadd.xlane.f32.xlu1 %v683_v58  ;;  %1169 = vpow2.f32 %v642_v26 }
  0xa3   :  { %v97_v63 = vpop.xlane.xlu2 %96  ;;  %v79_v25 = vpop.xlane.xlu1 %78 }
  0xa4   :  { %v131_v11 = vsub.f32 %v1444_v30, %v97_v63  ;;  %v595_v15 = vpop.xlane.xlu0 %594  ;;  %v125_v17 = vsub.f32 %v1449_v31, %v79_v25 }
  0xa5   :  { %v621_v12 = vsub.f32 %v1451_v32, %v595_v15 }
  0xa6   :  { %v1618_v14 = vpop.eup %1165  ;;  %v158_v13 = vmul.f32 1.442695, %v131_v11  ;;  %v146_v32 = vmul.f32 1.442695, %v125_v17 }
  0xa7   :  { %v1621_v21 = vpop.eup %1167  ;;  %v652_v22 = vmul.f32 1.442695, %v621_v12  ;;  %v698_v23 = vsel %vm67_vm0, %v1618_v14, 0.0 }
  0xa8   :  { %1171 = vpow2.f32 %v158_v13  ;;  %v668_v30 = vsel %vm67_vm0, %v1621_v21, 0.0  ;;  %699 = vadd.xlane.f32.xlu2 %v698_v23  ;;  %v1629_v34 = vpop.eup %1169 }
  0xa9   :  { %1173 = vpow2.f32 %v652_v22  ;;  %669 = vadd.xlane.f32.xlu0 %v668_v30  ;;  %v686_v52 = vsel %vm67_vm0, %v1629_v34, 0.0 }
  0xaa   :  { %213 = vadd.xlane.f32.xlu1 %v212_v28  ;;  %1175 = vpow2.f32 %v146_v32 }
  0xab   :  { %v583_v33 = vpop.xlane.xlu2 %582  ;;  %v565_v31 = vpop.xlane.xlu1 %564 }
  0xac   :  { %v617_v39 = vsub.f32 %v1459_v36, %v583_v33  ;;  %v112_v40 = vpop.xlane.xlu0 %111  ;;  %v611_v45 = vsub.f32 %v1461_v37, %v565_v31 }
  0xad   :  { %v136_v18 = vsub.f32 %v1466_v38, %v112_v40 }
  0xae   :  { %v1633_v20 = vpop.eup %1171  ;;  %v644_v41 = vmul.f32 1.442695, %v617_v39  ;;  %v632_v38 = vmul.f32 1.442695, %v611_v45 }
  0xaf   :  { %v1636_v19 = vpop.eup %1173  ;;  %v168_v1 = vmul.f32 1.442695, %v136_v18  ;;  %v203_v2 = vsel %vm67_vm0, %v1633_v20, 0.0 }
  0xb0   :  { %1177 = vpow2.f32 %v644_v41  ;;  %v701_v36 = vsel %vm67_vm0, %v1636_v19, 0.0  ;;  %204 = vadd.xlane.f32.xlu2 %v203_v2  ;;  %v1644_v8 = vpop.eup %1175 }
  0xb1   :  { %1179 = vpow2.f32 %v168_v1  ;;  %702 = vadd.xlane.f32.xlu0 %v701_v36  ;;  %v185_v12 = vsel %vm67_vm0, %v1644_v8, 0.0 }
  0xb2   :  { %687 = vadd.xlane.f32.xlu1 %v686_v52  ;;  %1181 = vpow2.f32 %v632_v38 }
  0xb3   :  { %v100_v7 = vpop.xlane.xlu2 %99  ;;  %v82_v37 = vpop.xlane.xlu1 %81 }
  0xb4   :  { %v132_v57 = vsub.f32 %v1477_v42, %v100_v7  ;;  %v598_v0 = vpop.xlane.xlu0 %597  ;;  %v126_v63 = vsub.f32 %v1482_v43, %v82_v37 }
  0xb5   :  { %v622_v58 = vsub.f32 %v1484_v44, %v598_v0 }
  0xb6   :  { %v1648_v24 = vpop.eup %1177  ;;  %v160_v26 = vmul.f32 1.442695, %v132_v57  ;;  %v148_v44 = vmul.f32 1.442695, %v126_v63 }
  0xb7   :  { %v1651_v25 = vpop.eup %1179  ;;  %v654_v11 = vmul.f32 1.442695, %v622_v58  ;;  %v689_v15 = vsel %vm67_vm0, %v1648_v24, 0.0 }
  0xb8   :  { %1183 = vpow2.f32 %v160_v26  ;;  %v218_v42 = vsel %vm67_vm0, %v1651_v25, 0.0  ;;  %690 = vadd.xlane.f32.xlu2 %v689_v15  ;;  %v1659_v17 = vpop.eup %1181 }
  0xb9   :  { %1185 = vpow2.f32 %v654_v11  ;;  %219 = vadd.xlane.f32.xlu0 %v218_v42  ;;  %v671_v18 = vsel %vm67_vm0, %v1659_v17, 0.0 }
  0xba   :  { %186 = vadd.xlane.f32.xlu1 %v185_v12  ;;  %1187 = vpow2.f32 %v148_v44 }
  0xbb   :  { %v586_v13 = vpop.xlane.xlu2 %585  ;;  %v568_v43 = vpop.xlane.xlu1 %567 }
  0xbc   :  { %v618_v22 = vsub.f32 %v1492_v48, %v586_v13  ;;  %v115_v23 = vpop.xlane.xlu0 %114  ;;  %v612_v33 = vsub.f32 %v1494_v49, %v568_v43 }
  0xbd   :  { %v137_v28 = vsub.f32 %v1499_v50, %v115_v23 }
  0xbe   :  { %v1663_v30 = vpop.eup %1183  ;;  %v646_v32 = vmul.f32 1.442695, %v618_v22  ;;  %v634_v50 = vmul.f32 1.442695, %v612_v33 }
  0xbf   :  { %v1666_v31 = vpop.eup %1185  ;;  %v170_v39 = vmul.f32 1.442695, %v137_v28  ;;  %v206_v40 = vsel %vm67_vm0, %v1663_v30, 0.0 }
  0xc0   :  { %1189 = vpow2.f32 %v646_v32  ;;  %v704_v48 = vsel %vm67_vm0, %v1666_v31, 0.0  ;;  %207 = vadd.xlane.f32.xlu2 %v206_v40  ;;  %v1674_v45 = vpop.eup %1187 }
  0xc1   :  { %1191 = vpow2.f32 %v170_v39  ;;  %705 = vadd.xlane.f32.xlu0 %v704_v48  ;;  %v188_v58 = vsel %vm67_vm0, %v1674_v45, 0.0 }
  0xc2   :  { %672 = vadd.xlane.f32.xlu1 %v671_v18  ;;  %1193 = vpow2.f32 %v634_v50 }
  0xc3   :  { %v103_v41 = vpop.xlane.xlu2 %102  ;;  %v85_v49 = vpop.xlane.xlu1 %84 }
  0xc4   :  { %v133_v1 = vsub.f32 %v1510_v54, %v103_v41  ;;  %v601_v2 = vpop.xlane.xlu0 %600  ;;  %v127_v7 = vsub.f32 %v1515_v55, %v85_v49 }
  0xc5   :  { %v623_v52 = vsub.f32 %v1517_v56, %v601_v2 }
  0xc6   :  { %v1678_v36 = vpop.eup %1189  ;;  %v162_v38 = vmul.f32 1.442695, %v133_v1  ;;  %v150_v56 = vmul.f32 1.442695, %v127_v7 }
  0xc7   :  { %v1681_v37 = vpop.eup %1191  ;;  %v656_v57 = vmul.f32 1.442695, %v623_v52  ;;  %v692_v0 = vsel %vm67_vm0, %v1678_v36, 0.0 }
  0xc8   :  { %1195 = vpow2.f32 %v162_v38  ;;  %v221_v54 = vsel %vm67_vm0, %v1681_v37, 0.0  ;;  %693 = vadd.xlane.f32.xlu2 %v692_v0  ;;  %v1689_v63 = vpop.eup %1193 }
  0xc9   :  { %1197 = vpow2.f32 %v656_v57  ;;  %222 = vadd.xlane.f32.xlu0 %v221_v54  ;;  %v674_v28 = vsel %vm67_vm0, %v1689_v63, 0.0 }
  0xca   :  { %189 = vadd.xlane.f32.xlu1 %v188_v58  ;;  %1199 = vpow2.f32 %v150_v56 }
  0xcb   :  { %v589_v26 = vpop.xlane.xlu2 %588  ;;  %v571_v55 = vpop.xlane.xlu1 %570 }
  0xcc   :  { %v619_v11 = vsub.f32 %v1525_v60, %v589_v26  ;;  %v118_v15 = vpop.xlane.xlu0 %117  ;;  %v613_v13 = vsub.f32 %v1527_v61, %v571_v55 }
  0xcd   :  { %v138_v12 = vsub.f32 %v1532_v62, %v118_v15 }
  0xce   :  { %v1693_v42 = vpop.eup %1195  ;;  %v648_v44 = vmul.f32 1.442695, %v619_v11  ;;  %v636_v62 = vmul.f32 1.442695, %v613_v13 }
  0xcf   :  { %v1696_v43 = vpop.eup %1197  ;;  %v172_v22 = vmul.f32 1.442695, %v138_v12  ;;  %v209_v23 = vsel %vm67_vm0, %v1693_v42, 0.0 }
  0xd0   :  { %1201 = vpow2.f32 %v648_v44  ;;  %v707_v60 = vsel %vm67_vm0, %v1696_v43, 0.0  ;;  %210 = vadd.xlane.f32.xlu2 %v209_v23  ;;  %v1704_v33 = vpop.eup %1199 }
  0xd1   :  { %1203 = vpow2.f32 %v172_v22  ;;  %708 = vadd.xlane.f32.xlu0 %v707_v60  ;;  %v191_v52 = vsel %vm67_vm0, %v1704_v33, 0.0 }
  0xd2   :  { %675 = vadd.xlane.f32.xlu1 %v674_v28  ;;  %1205 = vpow2.f32 %v636_v62 }
  0xd3   :  { %v607_v32 = vpop.xlane.xlu2 %606  ;;  %v121_v61 = vpop.xlane.xlu1 %120 }
  0xd4   :  { %v625_v39 = vsub.f32 %v1540_v5, %v607_v32  ;;  %v604_v40 = vpop.xlane.xlu0 %603  ;;  %v139_v41 = vsub.f32 %v1545_v9, %v121_v61 }
  0xd5   :  { %v624_v18 = vsub.f32 %v1547_v10, %v604_v40 }
  0xd6   :  { %v1708_v48 = vpop.eup %1201  ;;  %v660_v50 = vmul.f32 1.442695, %v625_v39  ;;  %v174_v10 = vmul.f32 1.442695, %v139_v41 }
  0xd7   :  { %v1711_v49 = vpop.eup %1203  ;;  %v658_v1 = vmul.f32 1.442695, %v624_v18  ;;  %v695_v2 = vsel %vm67_vm0, %v1708_v48, 0.0 }
  0xd8   :  { %1207 = vpow2.f32 %v660_v50  ;;  %v224_v5 = vsel %vm67_vm0, %v1711_v49, 0.0  ;;  %696 = vadd.xlane.f32.xlu2 %v695_v2  ;;  %v1719_v38 = vpop.eup %1205 }
  0xd9   :  { %1209 = vpow2.f32 %v658_v1  ;;  %225 = vadd.xlane.f32.xlu0 %v224_v5  ;;  %v677_v0 = vsel %vm67_vm0, %v1719_v38, 0.0 }
  0xda   :  { %192 = vadd.xlane.f32.xlu1 %v191_v52  ;;  %1211 = vpow2.f32 %v174_v10 }
  0xde   :  { %v1721_v9 = vpop.eup %1207 }
  0xdf   :  { %v1723_v7 = vpop.eup %1209  ;;  %v713_v57 = vsel %vm67_vm0, %v1721_v9, 0.0 }
  0xe0   :  { %v710_v58 = vsel %vm67_vm0, %v1723_v7, 0.0  ;;  %714 = vadd.xlane.f32.xlu2 %v713_v57  ;;  %v1731_v54 = vpop.eup %1211 }
  0xe1   :  { %711 = vadd.xlane.f32.xlu0 %v710_v58  ;;  %2658 = vst [vmem:[#allocation8_spill] sm:$0xff] %v1731_v54  ;;  %v227_v56 = vsel %vm67_vm0, %v1731_v54, 0.0 }
  0xe2   :  { %678 = vadd.xlane.f32.xlu1 %v677_v0 }
  0xea   :  { %228 = vadd.xlane.f32.xlu1 %v227_v56 }
  0xfb   :  { %v196_v26 = vpop.xlane.xlu2 %195 }
  0xfc   :  { %1213 = vrcp.f32 %v196_v26  ;;  %v178_v55 = vpop.xlane.xlu0 %177  ;;  %vm319_vm1 = vweird.f32 %v196_v26  ;;  %v323_v60 = vand.u32 2147483647, %v196_v26  ;;  %v325_v62 = vand.u32 2147483648, %v196_v26 }
  0xfd   :  { %1215 = vrcp.f32 %v178_v55  ;;  %v239_v39 = vand.u32 2147483647, %v178_v55  ;;  %v241_v18 = vand.u32 2147483648, %v178_v55  ;;  %vm235_vm3 = vweird.f32 %v178_v55 }
  0xfe   :  { %vm1747_vm6 = vcmp.eq.f32.partialorder %v323_v60, 8.507059e+37  ;;  %v326_v58 = vor.u32 1.1754944e-38, %v325_v62 }
  0xff   :  { %vm1753_vm7 = vcmp.eq.f32.partialorder %v239_v39, 8.507059e+37 }
 0x102   :  { %v1214_v11 = vpop.eup %1213 }
 0x103   :  { %v1216_v15 = vpop.eup %1215  ;;  %v315_v12 = vmul.f32 %v1214_v11, %v196_v26  ;;  %v667_v44 = vpop.xlane.xlu2 %666  ;;  %vm320_vm2 = vweird.f32 %v1214_v11 }
 0x104   :  { %v231_v13 = vmul.f32 %v1216_v15, %v178_v55  ;;  %1217 = vrcp.f32 %v667_v44  ;;  %v1737_v23 = vpop.xlane.xlu0 %198  ;;  %vm236_vm4 = vweird.f32 %v1216_v15  ;;  %vm1743_vm5 = vmor %vm319_vm1, %vm320_vm2  ;;  %v739_v5 = vand.u32 2147483647, %v667_v44 }
 0x105   :  { %v1735_v22 = vpop.xlane.xlu1 %180  ;;  %v316_v28 = vsub.f32 1.0, %v315_v12  ;;  %v741_v10 = vand.u32 2147483648, %v667_v44  ;;  %vm1758_vm8 = vmor %vm235_vm3, %vm236_vm4  ;;  %v242_v12 = vor.u32 1.1754944e-38, %v241_v18  ;;  %vm735_vm9 = vweird.f32 %v667_v44 }
 0x106   :  { %1219 = vrcp.f32 %v1735_v22  ;;  %v232_v32 = vsub.f32 1.0, %v231_v13  ;;  %vm249_vm10 = vweird.f32 %v1735_v22  ;;  %vm1772_vm11 = vcmp.eq.f32.partialorder %v739_v5, 8.507059e+37 }
 0x107   :  { %v317_v61 = vmul.f32 %v1214_v11, %v316_v28  ;;  %1221 = vrcp.f32 %v1737_v23  ;;  %v742_v18 = vor.u32 1.1754944e-38, %v741_v10  ;;  %v339_v55 = vand.u32 2147483648, %v1737_v23 }
 0x108   :  { %v233_v40 = vmul.f32 %v1216_v15, %v232_v32  ;;  %v253_v32 = vand.u32 2147483647, %v1735_v22  ;;  %vm333_vm15 = vweird.f32 %v1737_v23 }
 0x109   :  { %v318_v50 = vadd.f32 %v1214_v11, %v317_v61  ;;  %v255_v61 = vand.u32 2147483648, %v1735_v22 }
 0x10a   :  { %v1741_v41 = vpop.eup %1217  ;;  %v234_v52 = vadd.f32 %v1216_v15, %v233_v40  ;;  %vm254_vm2 = vcmp.eq.f32.partialorder %v253_v32, 8.507059e+37 }
 0x10b   :  { %v322_v0 = vsel %vm1743_vm5, %v1214_v11, %v318_v50  ;;  %v731_v26 = vmul.f32 %v1741_v41, %v667_v44  ;;  %v1764_v28 = vpop.xlane.xlu2 %183  ;;  %vm736_vm12 = vweird.f32 %v1741_v41  ;;  %v1809_v44 = vld [vmem:[%s2655_s2] sm:$0xff] }
 0x10c   :  { %v1220_v57 = vpop.eup %1219  ;;  %v238_v60 = vsel %vm1758_vm8, %v1216_v15, %v234_v52  ;;  %v327_v39 = vsel %vm1747_vm6, %v326_v58, %v322_v0  ;;  %v337_v52 = vand.u32 2147483647, %v1737_v23  ;;  %1223 = vrcp.f32 %v1764_v28  ;;  %v1785_v10 = vpop.xlane.xlu0 %681  ;;  %vm1797_vm14 = vmor %vm735_vm9, %vm736_vm12 }
 0x10d   :  { %v245_v13 = vmul.f32 %v1220_v57, %v1735_v22  ;;  %v1222_v11 = vpop.eup %1221  ;;  %v732_v62 = vsub.f32 1.0, %v731_v26  ;;  %v1777_v54 = vpop.xlane.xlu1 %663  ;;  %v243_v2 = vsel %vm1753_vm7, %v242_v12, %v238_v60  ;;  %vm250_vm13 = vweird.f32 %v1220_v57 }
 0x10e   :  { %v329_v1 = vmul.f32 %v1222_v11, %v1737_v23  ;;  %v488_v58 = vmul.f32 %v1560_v47, %v327_v39  ;;  %1225 = vrcp.f32 %v1777_v54  ;;  %vm334_vm0 = vweird.f32 %v1222_v11  ;;  %vm251_vm1 = vmor %vm249_vm10, %vm250_vm13 }
 0x10f   :  { %v246_v50 = vsub.f32 1.0, %v245_v13  ;;  %v733_v15 = vmul.f32 %v1741_v41, %v732_v62  ;;  %v1794_v13 = vld [vmem:[%s2655_s2 + $0x30] sm:$0xff]  ;;  %v482_v47 = vmul.f32 %v1563_v51, %v243_v2  ;;  %v256_v62 = vor.u32 1.1754944e-38, %v255_v61  ;;  %v32_v61 = vld [vmem:[%s2655_s2 + $0x8] sm:$0xff]  ;;  %vm335_vm4 = vmor %vm333_vm15, %vm334_vm0 }
 0x110   :  { %v330_v0 = vsub.f32 1.0, %v329_v1  ;;  %1227 = vrcp.f32 %v1785_v10  ;;  %vm1814_vm3 = vcmp.eq.f32.partialorder %v337_v52, 8.507059e+37  ;;  %v506_v32 = vmul.f32 %v488_v58, %v1794_v13 }
 0x111   :  { %v247_v5 = vmul.f32 %v1220_v57, %v246_v50  ;;  %v734_v26 = vadd.f32 %v1741_v41, %v733_v15  ;;  %vm263_vm5 = vweird.f32 %v1764_v28  ;;  %vm721_vm7 = vweird.f32 %v1777_v54 }
 0x112   :  { %v331_v60 = vmul.f32 %v1222_v11, %v330_v0  ;;  %v1818_v22 = vpop.eup %1223 }
 0x113   :  { %v248_v12 = vadd.f32 %v1220_v57, %v247_v5  ;;  %v738_v39 = vsel %vm1797_vm14, %v1741_v41, %v734_v26  ;;  %v340_v41 = vor.u32 1.1754944e-38, %v339_v55  ;;  %v259_v5 = vmul.f32 %v1818_v22, %v1764_v28  ;;  %v1832_v0 = vpop.xlane.xlu2 %216  ;;  %v1840_v55 = vld [vmem:[%s2655_s2 + $0x38] sm:$0xff] }
 0x114   :  { %v332_v1 = vadd.f32 %v1222_v11, %v331_v60  ;;  %v1226_v58 = vpop.eup %1225  ;;  %v500_v26 = vmul.f32 %v482_v47, %v1809_v44  ;;  %v743_v23 = vsel %vm1772_vm11, %v742_v18, %v738_v39  ;;  %v727_v18 = vand.u32 2147483648, %v1777_v54 }
 0x115   :  { %v252_v50 = vsel %vm251_vm1, %v1220_v57, %v248_v12  ;;  %v267_v57 = vand.u32 2147483647, %v1764_v28  ;;  %v260_v60 = vsub.f32 1.0, %v259_v5  ;;  %1229 = vrcp.f32 %v1832_v0  ;;  %v1858_v51 = vpop.xlane.xlu1 %684 }
 0x116   :  { %v257_v15 = vsel %vm254_vm2, %v256_v62, %v252_v50  ;;  %v336_v2 = vsel %vm335_vm4, %v1222_v11, %v332_v1  ;;  %v269_v11 = vand.u32 2147483648, %v1764_v28  ;;  %v717_v62 = vmul.f32 %v1226_v58, %v1777_v54  ;;  %v1228_v47 = vpop.eup %1227 }
 0x117   :  { %v483_v52 = vmul.f32 %v1578_v16, %v257_v15  ;;  %v341_v16 = vsel %vm1814_vm3, %v340_v41, %v336_v2  ;;  %vm1847_vm6 = vcmp.eq.f32.partialorder %v267_v57, 8.507059e+37  ;;  %v969_v15 = vmul.f32 %v1571_v59, %v743_v23 }
 0x118   :  { %v489_v12 = vmul.f32 %v1574_v4, %v341_v16  ;;  %v261_v4 = vmul.f32 %v1818_v22, %v260_v60  ;;  %v718_v1 = vsub.f32 1.0, %v717_v62  ;;  %vm264_vm8 = vweird.f32 %v1818_v22 }
 0x119   :  { %v501_v56 = vmul.f32 %v483_v52, %v32_v61  ;;  %v725_v41 = vand.u32 2147483647, %v1777_v54  ;;  %v801_v57 = vmul.f32 %v1228_v47, %v1785_v10  ;;  %vm722_vm9 = vweird.f32 %v1226_v58  ;;  %vm1874_vm10 = vmor %vm263_vm5, %vm264_vm8 }
 0x11a   :  { %v507_v50 = vmul.f32 %v489_v12, %v1840_v55  ;;  %v262_v2 = vadd.f32 %v1818_v22, %v261_v4  ;;  %v719_v5 = vmul.f32 %v1226_v58, %v718_v1  ;;  %v811_v12 = vand.u32 2147483648, %v1785_v10  ;;  %vm723_vm12 = vmor %vm721_vm7, %vm722_vm9 }
 0x11b   :  { %v1854_v39 = vadd.f32 %v501_v56, %v500_v26  ;;  %v1867_v26 = vpop.xlane.xlu0 %201  ;;  %v802_v16 = vsub.f32 1.0, %v801_v57  ;;  %v809_v56 = vand.u32 2147483647, %v1785_v10  ;;  %1231 = vrcp.f32 %v1858_v51  ;;  %v1879_v62 = vpop.eup %1229 }
 0x11c   :  { %v1864_v52 = vadd.f32 %v507_v50, %v506_v32  ;;  %v270_v32 = vor.u32 1.1754944e-38, %v269_v11  ;;  %v720_v23 = vadd.f32 %v1226_v58, %v719_v5  ;;  %v728_v60 = vor.u32 1.1754944e-38, %v727_v18  ;;  %v1889_v18 = vpop.xlane.xlu2 %699 }
 0x11d   :  { %vm805_vm11 = vweird.f32 %v1785_v10  ;;  %v266_v50 = vsel %vm1874_vm10, %v1818_v22, %v262_v2  ;;  %v803_v4 = vmul.f32 %v1228_v47, %v802_v16  ;;  %vm806_vm13 = vweird.f32 %v1228_v47 }
 0x11e   :  { %2675 = vst [vmem:[#allocation9_spill] sm:$0xff] %v1864_v52  ;;  %1233 = vrcp.f32 %v1867_v26  ;;  %v987_v28 = vmul.f32 %v969_v15, %v32_v61  ;;  %v724_v1 = vsel %vm723_vm12, %v1226_v58, %v720_v23  ;;  %vm726_vm14 = vcmp.eq.f32.partialorder %v725_v41, 8.507059e+37  ;;  %vm807_vm0 = vmor %vm805_vm11, %vm806_vm13 }
 0x11f   :  { %v413_v11 = vmul.f32 %v1879_v62, %v1832_v0  ;;  %v729_v57 = vsel %vm726_vm14, %v728_v60, %v724_v1  ;;  %v804_v5 = vadd.f32 %v1228_v47, %v803_v4  ;;  %vm1891_vm15 = vcmp.eq.f32.partialorder %v809_v56, 8.507059e+37  ;;  %v1920_v1 = vpop.xlane.xlu1 %213 }
 0x120   :  { %v812_v54 = vor.u32 1.1754944e-38, %v811_v12  ;;  %v271_v22 = vsel %vm1847_vm6, %v270_v32, %v266_v50  ;;  %v968_v2 = vmul.f32 %v1585_v27, %v729_v57  ;;  %vm417_vm1 = vweird.f32 %v1832_v0 }
 0x121   :  { %v414_v61 = vsub.f32 1.0, %v413_v11  ;;  %v1232_v58 = vpop.eup %1231  ;;  %v808_v15 = vsel %vm807_vm0, %v1228_v47, %v804_v5  ;;  %v421_v41 = vand.u32 2147483647, %v1832_v0  ;;  %v423_v16 = vand.u32 2147483648, %v1832_v0  ;;  %v1992_v5 = vld [vmem:[%s2655_s2 + $0x68] sm:$0xff] }
 0x122   :  { %1235 = vrcp.f32 %v1889_v18  ;;  %v986_v56 = vmul.f32 %v968_v2, %v1809_v44  ;;  %v815_v27 = vmul.f32 %v1232_v58, %v1858_v51  ;;  %v823_v10 = vand.u32 2147483647, %v1858_v51 }
 0x123   :  { %v415_v40 = vmul.f32 %v1879_v62, %v414_v61  ;;  %v484_v32 = vmul.f32 %v1588_v29, %v271_v22  ;;  %v813_v47 = vsel %vm1891_vm15, %v812_v54, %v808_v15  ;;  %vm418_vm2 = vweird.f32 %v1879_v62  ;;  %v1925_v29 = vld [vmem:[%s2655_s2 + $0x10] sm:$0xff] }
 0x124   :  { %v1908_v12 = vpop.eup %1233  ;;  %v825_v23 = vand.u32 2147483648, %v1858_v51  ;;  %v1915_v60 = vadd.f32 %v987_v28, %v986_v56  ;;  %v816_v50 = vsub.f32 1.0, %v815_v27  ;;  %vm1927_vm3 = vcmp.eq.f32.partialorder %v421_v41, 8.507059e+37  ;;  %vm1935_vm5 = vmor %vm417_vm1, %vm418_vm2  ;;  %v1956_v27 = vpop.xlane.xlu0 %669 }
 0x125   :  { %v416_v44 = vadd.f32 %v1879_v62, %v415_v40  ;;  %v343_v4 = vmul.f32 %v1908_v12, %v1867_v26  ;;  %v424_v57 = vor.u32 1.1754944e-38, %v423_v16  ;;  %vm819_vm4 = vweird.f32 %v1858_v51 }
 0x126   :  { %v353_v28 = vand.u32 2147483648, %v1867_v26  ;;  %v817_v59 = vmul.f32 %v1232_v58, %v816_v50  ;;  %vm820_vm6 = vweird.f32 %v1232_v58  ;;  %vm1939_vm7 = vcmp.eq.f32.partialorder %v823_v10, 8.507059e+37 }
 0x127   :  { %v344_v22 = vsub.f32 1.0, %v343_v4  ;;  %v974_v61 = vmul.f32 %v1591_v35, %v813_v47  ;;  %v420_v15 = vsel %vm1935_vm5, %v1879_v62, %v416_v44  ;;  %v826_v0 = vor.u32 1.1754944e-38, %v825_v23  ;;  %vm821_vm8 = vmor %vm819_vm4, %vm820_vm6  ;;  %v1966_v44 = vpop.xlane.xlu2 %204 }
 0x128   :  { %v1943_v2 = vpop.eup %1235  ;;  %1237 = vrcp.f32 %v1920_v1  ;;  %v1951_v41 = vmul.f32 %v484_v32, %v1925_v29  ;;  %v818_v16 = vadd.f32 %v1232_v58, %v817_v59  ;;  %vm347_vm9 = vweird.f32 %v1867_v26 }
 0x129   :  { %v345_v56 = vmul.f32 %v1908_v12, %v344_v22  ;;  %v885_v40 = vmul.f32 %v1943_v2, %v1889_v18  ;;  %vm348_vm10 = vweird.f32 %v1908_v12  ;;  %v351_v35 = vand.u32 2147483647, %v1867_v26 }
 0x12a   :  { %v354_v62 = vor.u32 1.1754944e-38, %v353_v28  ;;  %v425_v10 = vsel %vm1927_vm3, %v424_v57, %v420_v15  ;;  %v822_v32 = vsel %vm821_vm8, %v1232_v58, %v818_v16  ;;  %v992_v50 = vmul.f32 %v974_v61, %v1794_v13  ;;  %vm1974_vm11 = vmor %vm347_vm9, %vm348_vm10  ;;  %v1999_v61 = vpop.xlane.xlu1 %687 }
 0x12b   :  { %v346_v47 = vadd.f32 %v1908_v12, %v345_v56  ;;  %v886_v23 = vsub.f32 1.0, %v885_v40  ;;  %v827_v51 = vsel %vm1939_vm7, %v826_v0, %v822_v32  ;;  %v893_v4 = vand.u32 2147483647, %v1889_v18 }
 0x12c   :  { %1239 = vrcp.f32 %v1956_v27  ;;  %v975_v26 = vmul.f32 %v1599_v46, %v827_v51  ;;  %vm889_vm12 = vweird.f32 %v1889_v18  ;;  %vm890_vm13 = vweird.f32 %v1943_v2 }
 0x12d   :  { %v887_v58 = vmul.f32 %v1943_v2, %v886_v23  ;;  %v495_v57 = vmul.f32 %v1603_v6, %v425_v10  ;;  %v350_v28 = vsel %vm1974_vm11, %v1908_v12, %v346_v47  ;;  %v895_v46 = vand.u32 2147483648, %v1889_v18  ;;  %vm2001_vm15 = vmor %vm889_vm12, %vm890_vm13 }
 0x12e   :  { %v1981_v13 = vpop.eup %1237  ;;  %1241 = vrcp.f32 %v1966_v44  ;;  %v993_v59 = vmul.f32 %v975_v26, %v1840_v55  ;;  %v407_v22 = vand.u32 2147483647, %v1920_v1  ;;  %vm352_vm14 = vcmp.eq.f32.partialorder %v351_v35, 8.507059e+37 }
 0x12f   :  { %v888_v54 = vadd.f32 %v1943_v2, %v887_v58  ;;  %v399_v6 = vmul.f32 %v1981_v13, %v1920_v1  ;;  %vm2005_vm0 = vcmp.eq.f32.partialorder %v893_v4, 8.507059e+37  ;;  %vm403_vm1 = vweird.f32 %v1920_v1  ;;  %v2042_v58 = vld [vmem:[%s2655_s2 + $0x40] sm:$0xff] }
 0x130   :  { %v409_v55 = vand.u32 2147483648, %v1920_v1  ;;  %v2011_v15 = vadd.f32 %v993_v59, %v992_v50  ;;  %v355_v0 = vsel %vm352_vm14, %v354_v62, %v350_v28  ;;  %v2019_v35 = vmul.f32 %v495_v57, %v1992_v5  ;;  %v2031_v50 = vpop.xlane.xlu0 %702 }
 0x131   :  { %v892_v16 = vsel %vm2001_vm15, %v1943_v2, %v888_v54  ;;  %v400_v56 = vsub.f32 1.0, %v399_v6  ;;  %v896_v10 = vor.u32 1.1754944e-38, %v895_v46  ;;  %v753_v32 = vand.u32 2147483647, %v1956_v27 }
 0x132   :  { %v2016_v40 = vpop.eup %1239  ;;  %1243 = vrcp.f32 %v1999_v61  ;;  %vm2024_vm2 = vcmp.eq.f32.partialorder %v407_v22, 8.507059e+37  ;;  %v755_v62 = vand.u32 2147483648, %v1956_v27  ;;  %v490_v4 = vmul.f32 %v1606_v53, %v355_v0 }
 0x133   :  { %v401_v47 = vmul.f32 %v1981_v13, %v400_v56  ;;  %v745_v2 = vmul.f32 %v2016_v40, %v1956_v27  ;;  %v897_v26 = vsel %vm2005_vm0, %v896_v10, %v892_v16  ;;  %vm404_vm3 = vweird.f32 %v1981_v13 }
 0x134   :  { %v2033_v51 = vpop.eup %1241  ;;  %v410_v11 = vor.u32 1.1754944e-38, %v409_v55  ;;  %v365_v59 = vand.u32 2147483647, %v1966_v44  ;;  %vm749_vm4 = vweird.f32 %v1956_v27  ;;  %vm2049_vm5 = vcmp.eq.f32.partialorder %v753_v32, 8.507059e+37  ;;  %vm2057_vm6 = vmor %vm403_vm1, %vm404_vm3  ;;  %v2063_v55 = vpop.xlane.xlu2 %690 }
 0x135   :  { %v402_v57 = vadd.f32 %v1981_v13, %v401_v47  ;;  %v746_v28 = vsub.f32 1.0, %v745_v2  ;;  %v357_v46 = vmul.f32 %v2033_v51, %v1966_v44  ;;  %v367_v54 = vand.u32 2147483648, %v1966_v44 }
 0x136   :  { %1245 = vrcp.f32 %v2031_v50  ;;  %v756_v18 = vor.u32 1.1754944e-38, %v755_v62  ;;  %vm361_vm7 = vweird.f32 %v1966_v44  ;;  %v2066_v16 = vmul.f32 %v490_v4, %v2042_v58 }
 0x137   :  { %v747_v22 = vmul.f32 %v2016_v40, %v746_v28  ;;  %v358_v12 = vsub.f32 1.0, %v357_v46  ;;  %v980_v56 = vmul.f32 %v1618_v14, %v897_v26  ;;  %v406_v1 = vsel %vm2057_vm6, %v1981_v13, %v402_v57  ;;  %v43_v14 = vld [vmem:[%s2655_s2 + $0x60] sm:$0xff] }
 0x138   :  { %v1244_v0 = vpop.eup %1243  ;;  %vm750_vm8 = vweird.f32 %v2016_v40  ;;  %vm2075_vm9 = vcmp.eq.f32.partialorder %v365_v59, 8.507059e+37  ;;  %vm362_vm10 = vweird.f32 %v2033_v51  ;;  %v368_v62 = vor.u32 1.1754944e-38, %v367_v54  ;;  %v2096_v59 = vpop.xlane.xlu1 %186 }
 0x139   :  { %v748_v10 = vadd.f32 %v2016_v40, %v747_v22  ;;  %v359_v32 = vmul.f32 %v2033_v51, %v358_v12  ;;  %v829_v2 = vmul.f32 %v1244_v0, %v1999_v61  ;;  %v837_v13 = vand.u32 2147483647, %v1999_v61  ;;  %vm2090_vm11 = vmor %vm749_vm4, %vm750_vm8 }
 0x13a   :  { %1247 = vrcp.f32 %v2063_v55  ;;  %v411_v4 = vsel %vm2024_vm2, %v410_v11, %v406_v1  ;;  %v839_v46 = vand.u32 2147483648, %v1999_v61  ;;  %vm833_vm12 = vweird.f32 %v1999_v61  ;;  %vm2112_vm13 = vmor %vm361_vm7, %vm362_vm10 }
 0x13b   :  { %v360_v57 = vadd.f32 %v2033_v51, %v359_v32  ;;  %v830_v28 = vsub.f32 1.0, %v829_v2  ;;  %v752_v23 = vsel %vm2090_vm11, %v2016_v40, %v748_v10  ;;  %v907_v27 = vand.u32 2147483647, %v2031_v50 }
 0x13c   :  { %v2098_v54 = vpop.eup %1245  ;;  %v909_v11 = vand.u32 2147483648, %v2031_v50  ;;  %v2106_v6 = vmul.f32 %v980_v56, %v43_v14  ;;  %vm834_vm14 = vweird.f32 %v1244_v0  ;;  %v494_v1 = vmul.f32 %v1614_v3, %v411_v4  ;;  %v2146_v61 = vpop.xlane.xlu2 %207 }
 0x13d   :  { %v831_v12 = vmul.f32 %v1244_v0, %v830_v28  ;;  %v899_v40 = vmul.f32 %v2098_v54, %v2031_v50  ;;  %v364_v56 = vsel %vm2112_vm13, %v2033_v51, %v360_v57  ;;  %vm2122_vm15 = vcmp.eq.f32.partialorder %v837_v13, 8.507059e+37  ;;  %v2129_v28 = vpop.xlane.xlu0 %219  ;;  %vm835_vm1 = vmor %vm833_vm12, %vm834_vm14 }
 0x13e   :  { %vm903_vm0 = vweird.f32 %v2031_v50  ;;  %v757_v44 = vsel %vm2049_vm5, %v756_v18, %v752_v23  ;;  %v840_v2 = vor.u32 1.1754944e-38, %v839_v46  ;;  %vm2135_vm2 = vcmp.eq.f32.partialorder %v907_v27, 8.507059e+37 }
 0x13f   :  { %v832_v32 = vadd.f32 %v1244_v0, %v831_v12  ;;  %v900_v26 = vsub.f32 1.0, %v899_v40  ;;  %v910_v51 = vor.u32 1.1754944e-38, %v909_v11  ;;  %v851_v13 = vand.u32 2147483647, %v2063_v55 }
 0x140   :  { %v2131_v52 = vpop.eup %1247  ;;  %1249 = vrcp.f32 %v2096_v59  ;;  %v369_v53 = vsel %vm2075_vm9, %v368_v62, %v364_v56  ;;  %v2148_v46 = vmul.f32 %v494_v1, %v43_v14  ;;  %v970_v23 = vmul.f32 %v1621_v21, %v757_v44  ;;  %v2164_v21 = vld [vmem:[%s2655_s2 + $0x48] sm:$0xff]  ;;  %v2179_v1 = vpop.xlane.xlu1 %672 }
 0x141   :  { %v836_v18 = vsel %vm835_vm1, %v1244_v0, %v832_v32  ;;  %v901_v4 = vmul.f32 %v2098_v54, %v900_v26  ;;  %v843_v57 = vmul.f32 %v2131_v52, %v2063_v55  ;;  %vm904_vm3 = vweird.f32 %v2098_v54 }
 0x142   :  { %v853_v27 = vand.u32 2147483648, %v2063_v55  ;;  %v841_v47 = vsel %vm2122_vm15, %v840_v2, %v836_v18  ;;  %1251 = vrcp.f32 %v2129_v28  ;;  %v491_v11 = vmul.f32 %v1633_v20, %v369_v53  ;;  %vm2168_vm5 = vmor %vm903_vm0, %vm904_vm3 }
 0x143   :  { %v902_v0 = vadd.f32 %v2098_v54, %v901_v4  ;;  %v844_v62 = vsub.f32 1.0, %v843_v57  ;;  %vm847_vm4 = vweird.f32 %v2063_v55  ;;  %v283_v14 = vand.u32 2147483648, %v2096_v59 }
 0x144   :  { %1253 = vrcp.f32 %v2146_v61  ;;  %vm848_vm6 = vweird.f32 %v2131_v52  ;;  %vm2174_vm7 = vcmp.eq.f32.partialorder %v851_v13, 8.507059e+37  ;;  %v281_v40 = vand.u32 2147483647, %v2096_v59 }
 0x145   :  { %v845_v12 = vmul.f32 %v2131_v52, %v844_v62  ;;  %v2184_v50 = vmul.f32 %v970_v23, %v1925_v29  ;;  %v976_v10 = vmul.f32 %v1629_v34, %v841_v47  ;;  %v906_v44 = vsel %vm2168_vm5, %v2098_v54, %v902_v0  ;;  %vm2200_vm9 = vmor %vm847_vm4, %vm848_vm6  ;;  %v34_v62 = vld [vmem:[%s2655_s2 + $0x18] sm:$0xff] }
 0x146   :  { %v2181_v56 = vpop.eup %1249  ;;  %v854_v32 = vor.u32 1.1754944e-38, %v853_v27  ;;  %vm277_vm8 = vweird.f32 %v2096_v59  ;;  %v435_v13 = vand.u32 2147483647, %v2129_v28  ;;  %v2196_v53 = vmul.f32 %v491_v11, %v2164_v21  ;;  %v2216_v27 = vpop.xlane.xlu0 %705 }
 0x147   :  { %v846_v2 = vadd.f32 %v2131_v52, %v845_v12  ;;  %v273_v26 = vmul.f32 %v2181_v56, %v2096_v59  ;;  %v284_v29 = vor.u32 1.1754944e-38, %v283_v14  ;;  %vm431_vm10 = vweird.f32 %v2129_v28 }
 0x148   :  { %1255 = vrcp.f32 %v2179_v1  ;;  %v1252_v54 = vpop.eup %1251  ;;  %v911_v18 = vsel %vm2135_vm2, %v910_v51, %v906_v44  ;;  %vm2211_vm11 = vcmp.eq.f32.partialorder %v281_v40, 8.507059e+37  ;;  %v437_v23 = vand.u32 2147483648, %v2129_v28 }
 0x149   :  { %v850_v4 = vsel %vm2200_vm9, %v2131_v52, %v846_v2  ;;  %v274_v57 = vsub.f32 1.0, %v273_v26  ;;  %v2221_v0 = vmul.f32 %v976_v10, %v2042_v58  ;;  %v427_v3 = vmul.f32 %v1252_v54, %v2129_v28 }
 0x14a   :  { %v2218_v47 = vpop.eup %1253  ;;  %vm375_vm12 = vweird.f32 %v2146_v61  ;;  %v379_v52 = vand.u32 2147483647, %v2146_v61  ;;  %vm278_vm13 = vweird.f32 %v2181_v56  ;;  %vm2228_vm14 = vcmp.eq.f32.partialorder %v435_v13, 8.507059e+37  ;;  %v2252_v13 = vpop.xlane.xlu2 %693 }
 0x14b   :  { %v275_v51 = vmul.f32 %v2181_v56, %v274_v57  ;;  %v371_v11 = vmul.f32 %v2218_v47, %v2146_v61  ;;  %v981_v58 = vmul.f32 %v1636_v19, %v911_v18  ;;  %v855_v14 = vsel %vm2174_vm7, %v854_v32, %v850_v4  ;;  %vm2242_vm15 = vmor %vm277_vm8, %vm278_vm13 }
 0x14c   :  { %v428_v22 = vsub.f32 1.0, %v427_v3  ;;  %1257 = vrcp.f32 %v2216_v27  ;;  %v438_v40 = vor.u32 1.1754944e-38, %v437_v23  ;;  %v381_v44 = vand.u32 2147483648, %v2146_v61 }
 0x14d   :  { %v276_v12 = vadd.f32 %v2181_v56, %v275_v51  ;;  %v372_v10 = vsub.f32 1.0, %v371_v11  ;;  %vm432_vm0 = vweird.f32 %v1252_v54  ;;  %vm2246_vm1 = vcmp.eq.f32.partialorder %v379_v52, 8.507059e+37  ;;  %v2265_v52 = vpop.xlane.xlu1 %189 }
 0x14e   :  { %v1256_v2 = vpop.eup %1255  ;;  %v429_v19 = vmul.f32 %v1252_v54, %v428_v22  ;;  %vm763_vm2 = vweird.f32 %v2179_v1  ;;  %v767_v32 = vand.u32 2147483647, %v2179_v1  ;;  %v977_v34 = vmul.f32 %v1648_v24, %v855_v14  ;;  %vm2269_vm4 = vmor %vm431_vm10, %vm432_vm0 }
 0x14f   :  { %v280_v59 = vsel %vm2242_vm15, %v2181_v56, %v276_v12  ;;  %v373_v18 = vmul.f32 %v2218_v47, %v372_v10  ;;  %v759_v4 = vmul.f32 %v1256_v2, %v2179_v1  ;;  %v2261_v57 = vmul.f32 %v981_v58, %v1992_v5 }
 0x150   :  { %v430_v23 = vadd.f32 %v1252_v54, %v429_v19  ;;  %vm376_vm3 = vweird.f32 %v2218_v47  ;;  %v769_v3 = vand.u32 2147483648, %v2179_v1  ;;  %v921_v11 = vand.u32 2147483647, %v2216_v27  ;;  %v45_v1 = vld [vmem:[%s2655_s2 + $0x70] sm:$0xff] }
 0x151   :  { %v374_v56 = vadd.f32 %v2218_v47, %v373_v18  ;;  %v760_v51 = vsub.f32 1.0, %v759_v4  ;;  %1259 = vrcp.f32 %v2252_v13  ;;  %v285_v58 = vsel %vm2211_vm11, %v284_v29, %v280_v59  ;;  %vm2289_vm6 = vmor %vm375_vm12, %vm376_vm3 }
 0x152   :  { %v1258_v5 = vpop.eup %1257  ;;  %v434_v14 = vsel %vm2269_vm4, %v1252_v54, %v430_v23  ;;  %v382_v22 = vor.u32 1.1754944e-38, %v381_v44  ;;  %vm2280_vm5 = vcmp.eq.f32.partialorder %v767_v32, 8.507059e+37  ;;  %v2285_v12 = vmul.f32 %v977_v34, %v2164_v21  ;;  %v2300_v44 = vpop.xlane.xlu0 %222 }
 0x153   :  { %v761_v26 = vmul.f32 %v1256_v2, %v760_v51  ;;  %vm764_vm7 = vweird.f32 %v1256_v2  ;;  %vm917_vm8 = vweird.f32 %v2216_v27  ;;  %v439_v29 = vsel %vm2228_vm14, %v438_v40, %v434_v14  ;;  %v2329_v51 = vpop.xlane.xlu2 %210 }
 0x154   :  { %v378_v54 = vsel %vm2289_vm6, %v2218_v47, %v374_v56  ;;  %v770_v55 = vor.u32 1.1754944e-38, %v769_v3  ;;  %v913_v21 = vmul.f32 %v1258_v5, %v2216_v27  ;;  %v485_v61 = vmul.f32 %v1644_v8, %v285_v58  ;;  %vm765_vm10 = vmor %vm763_vm2, %vm764_vm7 }
 0x155   :  { %v762_v19 = vadd.f32 %v1256_v2, %v761_v26  ;;  %vm2303_vm9 = vcmp.eq.f32.partialorder %v921_v11, 8.507059e+37  ;;  %v923_v34 = vand.u32 2147483648, %v2216_v27  ;;  %v865_v40 = vand.u32 2147483647, %v2252_v13  ;;  %v2338_v28 = vpop.xlane.xlu1 %675 }
 0x156   :  { %v914_v47 = vsub.f32 1.0, %v913_v21  ;;  %v867_v59 = vand.u32 2147483648, %v2252_v13  ;;  %1261 = vrcp.f32 %v2265_v52  ;;  %v496_v18 = vmul.f32 %v1651_v25, %v439_v29 }
 0x157   :  { %v2316_v8 = vpop.eup %1259  ;;  %v383_v4 = vsel %vm2246_vm1, %v382_v22, %v378_v54  ;;  %v766_v23 = vsel %vm765_vm10, %v1256_v2, %v762_v19  ;;  %1263 = vrcp.f32 %v2300_v44  ;;  %vm918_vm11 = vweird.f32 %v1258_v5 }
 0x158   :  { %v771_v3 = vsel %vm2280_vm5, %v770_v55, %v766_v23  ;;  %v915_v24 = vmul.f32 %v1258_v5, %v914_v47  ;;  %v857_v56 = vmul.f32 %v2316_v8, %v2252_v13  ;;  %v2331_v25 = vmul.f32 %v485_v61, %v34_v62  ;;  %vm919_vm13 = vmor %vm917_vm8, %vm918_vm11 }
 0x159   :  { %v924_v20 = vor.u32 1.1754944e-38, %v923_v34  ;;  %vm861_vm12 = vweird.f32 %v2252_v13  ;;  %v297_v2 = vand.u32 2147483648, %v2265_v52  ;;  %v2336_v11 = vmul.f32 %v1663_v30, %v383_v4 }
 0x15a   :  { %v916_v58 = vadd.f32 %v1258_v5, %v915_v24  ;;  %v858_v14 = vsub.f32 1.0, %v857_v56  ;;  %v868_v22 = vor.u32 1.1754944e-38, %v867_v59  ;;  %v2340_v10 = vmul.f32 %v496_v18, %v45_v1  ;;  %v2382_v56 = vpop.xlane.xlu0 %708 }
 0x15b   :  { %v971_v26 = vmul.f32 %v1659_v17, %v771_v3  ;;  %vm2345_vm14 = vcmp.eq.f32.partialorder %v865_v40, 8.507059e+37  ;;  %v295_v54 = vand.u32 2147483647, %v2265_v52  ;;  %1265 = vrcp.f32 %v2329_v51 }
 0x15c   :  { %v1262_v30 = vpop.eup %1261  ;;  %v920_v55 = vsel %vm919_vm13, %v1258_v5, %v916_v58  ;;  %v859_v21 = vmul.f32 %v2316_v8, %v858_v14  ;;  %vm291_vm15 = vweird.f32 %v2265_v52  ;;  %v449_v61 = vand.u32 2147483647, %v2300_v44 }
 0x15d   :  { %v1264_v17 = vpop.eup %1263  ;;  %v925_v27 = vsel %vm2303_vm9, %v924_v20, %v920_v55  ;;  %vm862_vm0 = vweird.f32 %v2316_v8  ;;  %v287_v19 = vmul.f32 %v1262_v30, %v2265_v52  ;;  %v298_v34 = vor.u32 1.1754944e-38, %v297_v2 }
 0x15e   :  { %v860_v47 = vadd.f32 %v2316_v8, %v859_v21  ;;  %v441_v40 = vmul.f32 %v1264_v17, %v2300_v44  ;;  %vm445_vm1 = vweird.f32 %v2300_v44  ;;  %v451_v5 = vand.u32 2147483648, %v2300_v44  ;;  %vm2373_vm3 = vmor %vm861_vm12, %vm862_vm0 }
 0x15f   :  { %v2362_v59 = vmul.f32 %v971_v26, %v34_v62  ;;  %v288_v18 = vsub.f32 1.0, %v287_v19  ;;  %vm2364_vm2 = vcmp.eq.f32.partialorder %v295_v54, 8.507059e+37  ;;  %v393_v32 = vand.u32 2147483647, %v2329_v51  ;;  %v2389_v54 = vpop.xlane.xlu2 %696 }
 0x160   :  { %1267 = vrcp.f32 %v2338_v28  ;;  %v982_v23 = vmul.f32 %v1666_v31, %v925_v27  ;;  %v442_v24 = vsub.f32 1.0, %v441_v40  ;;  %vm2377_vm4 = vcmp.eq.f32.partialorder %v449_v61, 8.507059e+37 }
 0x161   :  { %vm389_vm5 = vweird.f32 %v2329_v51  ;;  %v1266_v20 = vpop.eup %1265  ;;  %v864_v31 = vsel %vm2373_vm3, %v2316_v8, %v860_v47  ;;  %v289_v2 = vmul.f32 %v1262_v30, %v288_v18  ;;  %vm292_vm6 = vweird.f32 %v1262_v30 }
 0x162   :  { %v395_v13 = vand.u32 2147483648, %v2329_v51  ;;  %v443_v58 = vmul.f32 %v1264_v17, %v442_v24  ;;  %vm446_vm7 = vweird.f32 %v1264_v17  ;;  %v452_v14 = vor.u32 1.1754944e-38, %v451_v5  ;;  %vm2403_vm9 = vmor %vm291_vm15, %vm292_vm6  ;;  %v2407_v5 = vpop.xlane.xlu1 %192 }
 0x163   :  { %v385_v26 = vmul.f32 %v1266_v20, %v2329_v51  ;;  %v290_v55 = vadd.f32 %v1262_v30, %v289_v2  ;;  %vm2391_vm8 = vcmp.eq.f32.partialorder %v393_v32, 8.507059e+37  ;;  %v783_v61 = vand.u32 2147483648, %v2338_v28  ;;  %vm2416_vm10 = vmor %vm445_vm1, %vm446_vm7 }
 0x164   :  { %1269 = vrcp.f32 %v2382_v56  ;;  %v2397_v8 = vmul.f32 %v982_v23, %v45_v1  ;;  %v869_v27 = vsel %vm2345_vm14, %v868_v22, %v864_v31  ;;  %v444_v47 = vadd.f32 %v1264_v17, %v443_v58 }
 0x165   :  { %v386_v40 = vsub.f32 1.0, %v385_v26  ;;  %v294_v32 = vsel %vm2403_vm9, %v1262_v30, %v290_v55  ;;  %v396_v52 = vor.u32 1.1754944e-38, %v395_v13  ;;  %vm777_vm11 = vweird.f32 %v2338_v28 }
 0x166   :  { %v2409_v18 = vpop.eup %1267  ;;  %v781_v22 = vand.u32 2147483647, %v2338_v28  ;;  %1271 = vrcp.f32 %v2389_v54  ;;  %v448_v29 = vsel %vm2416_vm10, %v1264_v17, %v444_v47  ;;  %vm390_vm12 = vweird.f32 %v1266_v20 }
 0x167   :  { %v387_v23 = vmul.f32 %v1266_v20, %v386_v40  ;;  %v773_v30 = vmul.f32 %v2409_v18, %v2338_v28  ;;  %v2428_v44 = vmul.f32 %v1678_v36, %v869_v27  ;;  %v784_v3 = vor.u32 1.1754944e-38, %v783_v61  ;;  %vm391_vm14 = vmor %vm389_vm5, %vm390_vm12 }
 0x168   :  { %vm931_vm13 = vweird.f32 %v2382_v56  ;;  %v935_v24 = vand.u32 2147483647, %v2382_v56  ;;  %v299_v31 = vsel %vm2364_vm2, %v298_v34, %v294_v32  ;;  %v937_v17 = vand.u32 2147483648, %v2382_v56 }
 0x169   :  { %v388_v2 = vadd.f32 %v1266_v20, %v387_v23  ;;  %v774_v13 = vsub.f32 1.0, %v773_v30  ;;  %v453_v26 = vsel %vm2377_vm4, %v452_v14, %v448_v29  ;;  %vm2439_vm15 = vcmp.eq.f32.partialorder %v781_v22, 8.507059e+37  ;;  %v2449_v14 = vpop.xlane.xlu0 %225 }
 0x16a   :  { %v1270_v58 = vpop.eup %1269  ;;  %vm875_vm0 = vweird.f32 %v2389_v54  ;;  %v879_v4 = vand.u32 2147483647, %v2389_v54  ;;  %1273 = vrcp.f32 %v2407_v5  ;;  %v881_v62 = vand.u32 2147483648, %v2389_v54 }
 0x16b   :  { %v392_v34 = vsel %vm391_vm14, %v1266_v20, %v388_v2  ;;  %v775_v55 = vmul.f32 %v2409_v18, %v774_v13  ;;  %v927_v61 = vmul.f32 %v1270_v58, %v2382_v56  ;;  %v2452_v27 = vmul.f32 %v1674_v45, %v299_v31 }
 0x16c   :  { %v1272_v51 = vpop.eup %1271  ;;  %v397_v19 = vsel %vm2391_vm8, %v396_v52, %v392_v34  ;;  %vm778_vm1 = vweird.f32 %v2409_v18  ;;  %vm2457_vm2 = vcmp.eq.f32.partialorder %v935_v24, 8.507059e+37  ;;  %v309_v1 = vand.u32 2147483647, %v2407_v5  ;;  %v2481_v24 = vpop.xlane.xlu1 %678 }
 0x16d   :  { %v776_v20 = vadd.f32 %v2409_v18, %v775_v55  ;;  %v928_v40 = vsub.f32 1.0, %v927_v61  ;;  %v871_v32 = vmul.f32 %v1272_v51, %v2389_v54  ;;  %v2465_v22 = vmul.f32 %v1681_v37, %v453_v26  ;;  %vm2470_vm4 = vmor %vm777_vm11, %vm778_vm1  ;;  %v2479_v37 = vpop.xlane.xlu2 %714 }
 0x16e   :  { %vm932_vm3 = vweird.f32 %v1270_v58  ;;  %v938_v45 = vor.u32 1.1754944e-38, %v937_v17  ;;  %1275 = vrcp.f32 %v2449_v14  ;;  %vm2474_vm5 = vcmp.eq.f32.partialorder %v879_v4, 8.507059e+37 }
 0x16f   :  { %v929_v52 = vmul.f32 %v1270_v58, %v928_v40  ;;  %v872_v29 = vsub.f32 1.0, %v871_v32  ;;  %v882_v30 = vor.u32 1.1754944e-38, %v881_v62  ;;  %vm305_vm6 = vweird.f32 %v2407_v5  ;;  %vm933_vm9 = vmor %vm931_vm13, %vm932_vm3 }
 0x170   :  { %v1274_v31 = vpop.eup %1273  ;;  %v2484_v28 = vmul.f32 %v1693_v42, %v397_v19  ;;  %v780_v2 = vsel %vm2470_vm4, %v2409_v18, %v776_v20  ;;  %vm876_vm7 = vweird.f32 %v1272_v51  ;;  %v311_v13 = vand.u32 2147483648, %v2407_v5 }
 0x171   :  { %v930_v17 = vadd.f32 %v1270_v58, %v929_v52  ;;  %v873_v26 = vmul.f32 %v1272_v51, %v872_v29  ;;  %v301_v4 = vmul.f32 %v1274_v31, %v2407_v5  ;;  %vm2491_vm8 = vcmp.eq.f32.partialorder %v309_v1, 8.507059e+37  ;;  %vm877_vm11 = vmor %vm875_vm0, %vm876_vm7 }
 0x172   :  { %vm459_vm10 = vweird.f32 %v2449_v14  ;;  %v463_v42 = vand.u32 2147483647, %v2449_v14  ;;  %v465_v18 = vand.u32 2147483648, %v2449_v14  ;;  %1277 = vrcp.f32 %v2479_v37 }
 0x173   :  { %v785_v55 = vsel %vm2439_vm15, %v784_v3, %v780_v2  ;;  %v934_v61 = vsel %vm933_vm9, %v1270_v58, %v930_v17  ;;  %v874_v62 = vadd.f32 %v1272_v51, %v873_v26  ;;  %v302_v19 = vsub.f32 1.0, %v301_v4  ;;  %v2512_v58 = vpop.xlane.xlu0 %711 }
 0x174   :  { %v1276_v20 = vpop.eup %1275  ;;  %v939_v40 = vsel %vm2457_vm2, %v938_v45, %v934_v61  ;;  %vm306_vm12 = vweird.f32 %v1274_v31  ;;  %v312_v56 = vor.u32 1.1754944e-38, %v311_v13  ;;  %1279 = vrcp.f32 %v2481_v24 }
 0x175   :  { %v878_v32 = vsel %vm877_vm11, %v1272_v51, %v874_v62  ;;  %v303_v1 = vmul.f32 %v1274_v31, %v302_v19  ;;  %v455_v36 = vmul.f32 %v1276_v20, %v2449_v14  ;;  %v963_v3 = vand.u32 2147483647, %v2479_v37  ;;  %vm307_vm15 = vmor %vm305_vm6, %vm306_vm12 }
 0x176   :  { %v972_v21 = vmul.f32 %v1689_v63, %v785_v55  ;;  %vm2515_vm13 = vcmp.eq.f32.partialorder %v463_v42, 8.507059e+37  ;;  %v466_v54 = vor.u32 1.1754944e-38, %v465_v18  ;;  %v965_v45 = vand.u32 2147483648, %v2479_v37 }
 0x177   :  { %v883_v52 = vsel %vm2474_vm5, %v882_v30, %v878_v32  ;;  %v304_v51 = vadd.f32 %v1274_v31, %v303_v1  ;;  %v456_v29 = vsub.f32 1.0, %v455_v36  ;;  %vm959_vm14 = vweird.f32 %v2479_v37 }
 0x178   :  { %v1278_v2 = vpop.eup %1277  ;;  %v983_v13 = vmul.f32 %v1696_v43, %v939_v40  ;;  %vm460_vm0 = vweird.f32 %v1276_v20  ;;  %v795_v63 = vand.u32 2147483647, %v2481_v24  ;;  %1281 = vrcp.f32 %v2512_v58  ;;  %v2535_v43 = vpop.xlane.xlu1 %228 }
 0x179   :  { %v308_v17 = vsel %vm307_vm15, %v1274_v31, %v304_v51  ;;  %v457_v26 = vmul.f32 %v1276_v20, %v456_v29  ;;  %v955_v23 = vmul.f32 %v1278_v2, %v2479_v37  ;;  %vm2530_vm1 = vcmp.eq.f32.partialorder %v963_v3, 8.507059e+37  ;;  %vm461_vm4 = vmor %vm459_vm10, %vm460_vm0  ;;  %v42_v37 = vld [vmem:[%s2655_s2 + $0x58] sm:$0xff] }
 0x17a   :  { %v797_v4 = vand.u32 2147483648, %v2481_v24  ;;  %v1280_v42 = vpop.eup %1279  ;;  %v979_v5 = vmul.f32 %v1708_v48, %v883_v52  ;;  %v313_v18 = vsel %vm2491_vm8, %v312_v56, %v308_v17  ;;  %v966_v55 = vor.u32 1.1754944e-38, %v965_v45 }
 0x17b   :  { %vm791_vm2 = vweird.f32 %v2481_v24  ;;  %v458_v31 = vadd.f32 %v1276_v20, %v457_v26  ;;  %v956_v61 = vsub.f32 1.0, %v955_v23  ;;  %v787_v62 = vmul.f32 %v1280_v42, %v2481_v24 }
 0x17c   :  { %vm945_vm3 = vweird.f32 %v2512_v58  ;;  %v949_v19 = vand.u32 2147483647, %v2512_v58  ;;  %vm960_vm5 = vweird.f32 %v1278_v2  ;;  %vm2547_vm6 = vcmp.eq.f32.partialorder %v795_v63, 8.507059e+37 }
 0x17d   :  { %v951_v34 = vand.u32 2147483648, %v2512_v58  ;;  %1283 = vrcp.f32 %v2535_v43  ;;  %v462_v40 = vsel %vm461_vm4, %v1276_v20, %v458_v31  ;;  %v957_v56 = vmul.f32 %v1278_v2, %v956_v61  ;;  %vm961_vm9 = vmor %vm959_vm14, %vm960_vm5 }
 0x17e   :  { %v788_v32 = vsub.f32 1.0, %v787_v62  ;;  %v798_v1 = vor.u32 1.1754944e-38, %v797_v4  ;;  %v1282_v36 = vpop.eup %1281  ;;  %v487_v3 = vmul.f32 %v1704_v33, %v313_v18  ;;  %v467_v14 = vsel %vm2515_vm13, %v466_v54, %v462_v40  ;;  %v35_v54 = vld [vmem:[%s2655_s2 + $0x20] sm:$0xff]  ;;  %v46_v18 = vld [vmem:[%s2655_s2 + $0x78] sm:$0xff] }
 0x17f   :  { %vm792_vm7 = vweird.f32 %v1280_v42  ;;  %v479_v45 = vand.u32 2147483648, %v2535_v43  ;;  %v958_v52 = vadd.f32 %v1278_v2, %v957_v56  ;;  %v941_v29 = vmul.f32 %v1282_v36, %v2512_v58  ;;  %v47_v58 = vld [vmem:[%s2655_s2 + $0x80] sm:$0xff] }
 0x180   :  { %v789_v51 = vmul.f32 %v1280_v42, %v788_v32  ;;  %vm2558_vm8 = vcmp.eq.f32.partialorder %v949_v19, 8.507059e+37  ;;  %v477_v20 = vand.u32 2147483647, %v2535_v43  ;;  %v498_v17 = vmul.f32 %v1711_v49, %v467_v14  ;;  %v41_v49 = vld [vmem:[%s2655_s2 + $0x50] sm:$0xff]  ;;  %vm793_vm12 = vmor %vm791_vm2, %vm792_vm7 }
 0x181   :  { %vm946_vm10 = vweird.f32 %v1282_v36  ;;  %v952_v33 = vor.u32 1.1754944e-38, %v951_v34  ;;  %v480_v47 = vor.u32 1.1754944e-38, %v479_v45  ;;  %v962_v26 = vsel %vm961_vm9, %v1278_v2, %v958_v52 }
 0x182   :  { %v790_v23 = vadd.f32 %v1280_v42, %v789_v51  ;;  %v942_v4 = vsub.f32 1.0, %v941_v29  ;;  %vm473_vm11 = vweird.f32 %v2535_v43  ;;  %v990_v31 = vmul.f32 %v972_v21, %v35_v54  ;;  %v48_v21 = vld [vmem:[%s2655_s2 + $0x88] sm:$0xff]  ;;  %vm947_vm15 = vmor %vm945_vm3, %vm946_vm10 }
 0x183   :  { %v1284_v61 = vpop.eup %1283  ;;  %v967_v2 = vsel %vm2530_vm1, %v966_v55, %v962_v26  ;;  %v996_v62 = vmul.f32 %v2428_v44, %v41_v49  ;;  %v997_v19 = vmul.f32 %v979_v5, %v42_v37  ;;  %v1001_v34 = vmul.f32 %v983_v13, %v46_v18 }
 0x184   :  { %v794_v40 = vsel %vm793_vm12, %v1280_v42, %v790_v23  ;;  %v943_v56 = vmul.f32 %v1282_v36, %v942_v4  ;;  %v469_v32 = vmul.f32 %v1284_v61, %v2535_v43  ;;  %vm2587_vm13 = vcmp.eq.f32.partialorder %v477_v20, 8.507059e+37 }
 0x185   :  { %v1006_v24 = vadd.f32 %v2261_v57, %v2106_v6  ;;  %v799_v44 = vsel %vm2547_vm6, %v798_v1, %v794_v40  ;;  %v985_v13 = vmul.f32 %v1721_v9, %v967_v2  ;;  %v1007_v30 = vadd.f32 %v1915_v60, %v2184_v50  ;;  %v36_v6 = vld [vmem:[%s2655_s2 + $0x28] sm:$0xff]  ;;  %v2764_v2 = vld [vmem:[#allocation8_spill] sm:$0xff] }
 0x186   :  { %v1008_v42 = vadd.f32 %v2011_v15, %v2221_v0  ;;  %v973_v5 = vmul.f32 %v1719_v38, %v799_v44  ;;  %v944_v55 = vadd.f32 %v1282_v36, %v943_v56  ;;  %v470_v45 = vsub.f32 1.0, %v469_v32 }
 0x187   :  { %vm474_vm14 = vweird.f32 %v1284_v61  ;;  %v1003_v9 = vmul.f32 %v985_v13, %v48_v21  ;;  %v1009_v57 = vadd.f32 %v1006_v24, %v2397_v8  ;;  %v1010_v60 = vadd.f32 %v1007_v30, %v2362_v59 }
 0x188   :  { %v1011_v15 = vadd.f32 %v1008_v42, %v2285_v12  ;;  %v948_v50 = vsel %vm947_vm15, %v1282_v36, %v944_v55  ;;  %v471_v38 = vmul.f32 %v1284_v61, %v470_v45  ;;  %v991_v0 = vmul.f32 %v973_v5, %v36_v6  ;;  %vm475_vm1 = vmor %vm473_vm11, %vm474_vm14 }
 0x189   :  { %vm1025_vm0 = vcmask 7168   ;;  %v953_v48 = vsel %vm2558_vm8, %v952_v33, %v948_v50  ;;  %v1012_v1 = vadd.f32 %v1009_v57, %v1001_v34  ;;  %v1013_v52 = vadd.f32 %v1010_v60, %v990_v31 }
 0x18a   :  { %v1014_v51 = vadd.f32 %v1011_v15, %v996_v62  ;;  %v984_v8 = vmul.f32 %v1723_v7, %v953_v48  ;;  %v472_v29 = vadd.f32 %v1284_v61, %v471_v38  ;;  %v504_v59 = vmul.f32 %v2452_v27, %v35_v54 }
 0x18b   :  { %v505_v12 = vmul.f32 %v487_v3, %v36_v6  ;;  %v1016_v36 = vadd.f32 %v1013_v52, %v991_v0  ;;  %v510_v20 = vmul.f32 %v2336_v11, %v41_v49  ;;  %v515_v33 = vmul.f32 %v2465_v22, %v46_v18  ;;  %v2765_v11 = vld [vmem:[#allocation9_spill] sm:$0xff] }
 0x18c   :  { %v1017_v63 = vadd.f32 %v1014_v51, %v997_v19  ;;  %v476_v26 = vsel %vm475_vm1, %v1284_v61, %v472_v29  ;;  %v1002_v23 = vmul.f32 %v984_v8, %v47_v58  ;;  %v516_v4 = vmul.f32 %v498_v17, %v47_v58 }
 0x18d   :  { %v520_v7 = vadd.f32 %v2019_v35, %v2148_v46  ;;  %v481_v27 = vsel %vm2587_vm13, %v480_v47, %v476_v26  ;;  %v1019_v3 = vand.u32 2147483647, %v1016_v36  ;;  %v521_v43 = vadd.f32 %v1854_v39, %v1951_v41 }
 0x18e   :  { %v1020_v54 = vand.u32 2147483647, %v1017_v63  ;;  %v1015_v31 = vadd.f32 %v1012_v1, %v1002_v23  ;;  %v499_v62 = vmul.f32 %v2764_v2, %v481_v27  ;;  %v522_v22 = vadd.f32 %v2765_v11, %v2066_v16 }
 0x18f   :  { %v523_v49 = vadd.f32 %v520_v7, %v2340_v10  ;;  %v1057_v17 = vmul.f32 %v1019_v3, %v1019_v3  ;;  %v511_v35 = vmul.f32 %v2484_v28, %v42_v37  ;;  %v524_v46 = vadd.f32 %v521_v43, %v2331_v25 }
 0x190   :  { %v1058_v18 = vmul.f32 %v1020_v54, %v1020_v54  ;;  %v1018_v47 = vadd.f32 %v1015_v31, %v1003_v9  ;;  %v517_v61 = vmul.f32 %v499_v62, %v48_v21  ;;  %v525_v19 = vadd.f32 %v522_v22, %v2196_v53 }
 0x191   :  { %v526_v34 = vadd.f32 %v523_v49, %v515_v33  ;;  %v1060_v39 = vsel %vm1025_vm0, %v1057_v17, 0.0  ;;  %v527_v40 = vadd.f32 %v524_v46, %v504_v59 }
 0x192   :  { %v1061_v41 = vsel %vm1025_vm0, %v1058_v18, 0.0  ;;  %v1021_v56 = vand.u32 2147483647, %v1018_v47  ;;  %v528_v32 = vadd.f32 %v525_v19, %v510_v20 }
 0x193   :  { %v1062_v16 = vadd.f32 %v1061_v41, %v1060_v39  ;;  %v529_v10 = vadd.f32 %v526_v34, %v516_v4  ;;  %v530_v14 = vadd.f32 %v527_v40, %v505_v12 }
 0x194   :  { %v1059_v24 = vmul.f32 %v1021_v56, %v1021_v56  ;;  %v531_v44 = vadd.f32 %v528_v32, %v511_v35 }
 0x195   :  { %v532_v28 = vadd.f32 %v529_v10, %v517_v61  ;;  %v533_v37 = vand.u32 2147483647, %v530_v14 }
 0x196   :  { %v1063_v25 = vsel %vm1025_vm0, %v1059_v24, 0.0  ;;  %v534_v21 = vand.u32 2147483647, %v531_v44 }
 0x197   :  { %v535_v13 = vand.u32 2147483647, %v532_v28  ;;  %v1064_v53 = vadd.f32 %v1063_v25, %v1062_v16  ;;  %v1040_v30 = vmul.f32 %v533_v37, %v533_v37  ;;  %v1022_v42 = vmul.f32 %v1019_v3, %v533_v37 }
 0x198   :  { %v1041_v5 = vmul.f32 %v534_v21, %v534_v21  ;;  %v1023_v45 = vmul.f32 %v1020_v54, %v534_v21 }
 0x199   :  { %v1042_v55 = vmul.f32 %v535_v13, %v535_v13  ;;  %v1024_v6 = vmul.f32 %v1021_v56, %v535_v13  ;;  %1065 = vadd.xlane.f32.xlu2 %v1064_v53  ;;  %v1043_v9 = vsel %vm1025_vm0, %v1040_v30, 0.0  ;;  %v1026_v57 = vsel %vm1025_vm0, %v1022_v42, 0.0 }
 0x19a   :  { %v1044_v60 = vsel %vm1025_vm0, %v1041_v5, 0.0  ;;  %v1027_v50 = vsel %vm1025_vm0, %v1023_v45, 0.0 }
 0x19b   :  { %v1046_v15 = vsel %vm1025_vm0, %v1042_v55, 0.0  ;;  %v1029_v38 = vsel %vm1025_vm0, %v1024_v6, 0.0  ;;  %v1045_v0 = vadd.f32 %v1044_v60, %v1043_v9  ;;  %v1028_v48 = vadd.f32 %v1027_v50, %v1026_v57 }
 0x19d   :  { %v1047_v58 = vadd.f32 %v1046_v15, %v1045_v0  ;;  %v1030_v1 = vadd.f32 %v1029_v38, %v1028_v48 }
 0x19f   :  { %1048 = vadd.xlane.f32.xlu1 %v1047_v58  ;;  %1031 = vadd.xlane.f32.xlu0 %v1030_v1 }
 0x20c   :  { %v1066_v52 = vpop.xlane.xlu2 %1065 }
 0x20d   :  { %v1067_v51 = vrot.slane %v1066_v52, 4 }
 0x20f   :  { %v1068_v8 = vadd.f32 %v1067_v51, %v1066_v52 }
 0x211   :  { %v1069_v12 = vrot.slane %v1068_v8, 2 }
 0x212   :  { %v1049_v29 = vpop.xlane.xlu1 %1048  ;;  %v1032_v59 = vpop.xlane.xlu0 %1031 }
 0x213   :  { %v1050_v36 = vrot.slane %v1049_v29, 4  ;;  %v1033_v63 = vrot.slane %v1032_v59, 4  ;;  %v1070_v26 = vadd.f32 %v1069_v12, %v1068_v8 }
 0x215   :  { %v1051_v20 = vadd.f32 %v1050_v36, %v1049_v29  ;;  %v1034_v33 = vadd.f32 %v1033_v63, %v1032_v59  ;;  %v1071_v43 = vrot.slane %v1070_v26, 1 }
 0x217   :  { %v1052_v23 = vrot.slane %v1051_v20, 2  ;;  %v1035_v4 = vrot.slane %v1034_v33, 2  ;;  %v1072_v62 = vadd.f32 %v1071_v43, %v1070_v26 }
 0x219   :  { %v1053_v7 = vadd.f32 %v1052_v23, %v1051_v20  ;;  %v1036_v27 = vadd.f32 %v1035_v4, %v1034_v33 }
 0x21b   :  { %v1037_v3 = vrot.slane %v1036_v27, 1  ;;  %v1054_v54 = vrot.slane %v1053_v7, 1 }
 0x21d   :  { %v1038_v31 = vadd.f32 %v1037_v3, %v1036_v27  ;;  %v1055_v2 = vadd.f32 %v1054_v54, %v1053_v7 }
 0x21f   :  { %1126 = vpush %v1038_v31 }
 0x220   :  { %1128 = vpush %v1055_v2 }
 0x221   :  { %1130 = vpush %v1072_v62 }
 0x250   :  { %s2647_s2 = spop %1126 }
 0x251   :  { %s1129_s5 = spop %1128 }
 0x252   :  { %s1131_s6 = spop %1130 }
 0x253   :  { %s1074_s7 = smul.f32 %s1131_s6, %s1129_s5 }
 0x255   :  { %s1075_s9 = smax.f32 %s1332_s8, %s1074_s7 }
 0x256   :  { %v1076_v11 = vstv %s1075_s9 }
 0x257   :  { %1285 = vrsqrt.f32 %v1076_v11  ;;  %vm1084_vm2 = vcmp.eq.f32.partialorder %v1076_v11, inf  ;;  %v1087_v61 = vand.u32 2147483648, %v1076_v11  ;;  %vm1086_vm3 = vcmp.eq.f32.partialorder %v1076_v11, 0.0 }
 0x25d   :  { %v1286_v22 = vpop.eup %1285 }
 0x25e   :  { %v1078_v49 = vmul.f32 %v1286_v22, %v1076_v11 }
 0x260   :  { %v1079_v17 = vmul.f32 %v1286_v22, %v1078_v49 }
 0x262   :  { %v1080_v18 = vmul.f32 0.5, %v1079_v17 }
 0x264   :  { %v1081_v35 = vsub.f32 1.5, %v1080_v18 }
 0x266   :  { %v1082_v46 = vmul.f32 %v1286_v22, %v1081_v35 }
 0x268   :  { %v1083_v47 = vmul.f32 %v1082_v46, %v1076_v11 }
 0x26a   :  { %v1085_v19 = vsel %vm1084_vm2, %v1076_v11, %v1083_v47 }
 0x26b   :  { %v1088_v34 = vsel %vm1086_vm3, %v1087_v61, %v1085_v19 }
 0x26c   :  { %1132 = vpush %v1088_v34 }
 0x29d   :  { %s1133_s10 = spop %1132 }
 0x29e   :  { %v1090_v39 = vstv %s1133_s10 }
 0x29f   :  { %1287 = vrcp.f32 %v1090_v39  ;;  %v1102_v16 = vand.u32 2147483648, %v1090_v39  ;;  %v1100_v10 = vand.u32 2147483647, %v1090_v39  ;;  %vm1096_vm5 = vweird.f32 %v1090_v39 }
 0x2a1   :  { %v1103_v24 = vor.u32 1.1754944e-38, %v1102_v16  ;;  %vm1101_vm7 = vcmp.eq.f32.partialorder %v1100_v10, 8.507059e+37 }
 0x2a5   :  { %v1288_v41 = vpop.eup %1287 }
 0x2a6   :  { %v1092_v40 = vmul.f32 %v1288_v41, %v1090_v39  ;;  %vm1097_vm4 = vweird.f32 %v1288_v41 }
 0x2a7   :  { %vm1098_vm6 = vmor %vm1096_vm5, %vm1097_vm4 }
 0x2a8   :  { %v1093_v56 = vsub.f32 1.0, %v1092_v40 }
 0x2aa   :  { %v1094_v32 = vmul.f32 %v1288_v41, %v1093_v56 }
 0x2ac   :  { %v1095_v14 = vadd.f32 %v1288_v41, %v1094_v32 }
 0x2ae   :  { %v1099_v44 = vsel %vm1098_vm6, %v1288_v41, %v1095_v14 }
 0x2af   :  { %v1104_v28 = vsel %vm1101_vm7, %v1103_v24, %v1099_v44 }
 0x2b0   :  { %1134 = vpush %v1104_v28 }
 0x2e1   :  { %s1135_s11 = spop %1134 }
 0x2e2   :  { %s1106_s15 = smul.f32 %s1135_s11, %s2647_s2 }
 0x2e4   :  { %s1107_s16 = ssub.f32 0.0, %s1106_s15 }
 0x2e6   :  { %1109 = sst [smem:[#allocation5]] %s1107_s16 }
 0x2e7   :  { %1118 = dma.smem_to_hbm %s1333_s17, 16, %s1116_s14, [#allocation4]  }
 0x2e8   :  { %1327 = dma.done.wait [#allocation4], 16  }
 0x2e9   :  { %1328 = vsyncadd [#allocation4], 4294967280 }
 0x2ea   :  { %1123 = sfence }
 0x2eb   :  { %1124 = vsyncpa [#allocation3], 1 }
 0x2ec   :  { %1125 = vsyncpa [#allocation4], 1 }

</bundles_post_ra>
